<compile_context>
chip_gen: v7x
topology: tpu7x:2x2x1
jax: 0.10.0
libtpu: 0.0.40
codegen_flags: <defaults>
</compile_context>

<pallas_src>
import jax
import jax.numpy as jnp
from jax.experimental import pallas as pl
from jax.experimental.pallas import tpu as pltpu


def attention_kernel(enc_ref, s_ref, mask_ref, cov_ref, cov_col_ref,
                     wh_ref, ws_ref, wsb_ref, wc_ref, v_ref,
                     ctx_ref, attn_ref, newcov_ref):
    # Per-grid-step views:
    #   enc_ref     (Bt, Lp, D) f32     s_ref   (Bt, D) f32
    #   mask_ref    (Bt, Lp)    f32     cov_ref (Bt, Lp) f32
    #   cov_col_ref (Bt, Lp, 1) f32
    #   wh_ref/ws_ref (D, D) bf16, wsb_ref/wc_ref/v_ref (1, D) f32
    bt, lp, d = enc_ref.shape
    enc = enc_ref[...]                                              # (Bt, Lp, D)

    # --- MXU projections: bf16 operands, f32 accumulation ---------------------
    enc_bf = enc.reshape(bt * lp, d).astype(jnp.bfloat16)
    enc_feat = jnp.dot(enc_bf, wh_ref[...],
                       preferred_element_type=jnp.float32).reshape(bt, lp, d)
    dec_feat = jnp.dot(s_ref[...].astype(jnp.bfloat16), ws_ref[...],
                       preferred_element_type=jnp.float32) + wsb_ref[...]   # (Bt, D)

    # --- coverage feature: pure VPU broadcast multiply (no K=1 MXU op) --------
    cov_feat = cov_col_ref[...] * wc_ref[...][None, :, :]           # (Bt, Lp, D)

    att = jnp.tanh(enc_feat + dec_feat[:, None, :] + cov_feat)      # f32, (Bt, Lp, D)

    # --- score: multiply + lane reduce against v (no att.T transpose) ---------
    logits = jnp.sum(att * v_ref[...][None, :, :], axis=-1)         # (Bt, Lp)

    # --- masked softmax, single normalization (mask fused) --------------------
    m = jnp.max(logits, axis=-1, keepdims=True)
    p = jnp.exp(logits - m) * mask_ref[...]
    attn = p / jnp.sum(p, axis=-1, keepdims=True)                   # (Bt, Lp)

    # --- context: broadcast multiply + reduce over the sequence axis ----------
    ctx = jnp.sum(attn[:, :, None] * enc, axis=1)                   # (Bt, D)

    ctx_ref[...] = ctx.astype(ctx_ref.dtype)
    attn_ref[...] = attn.astype(attn_ref.dtype)
    newcov_ref[...] = (cov_ref[...] + attn).astype(newcov_ref.dtype)


def attention_pallas(encoder_output, s_t, x_padding_masks, coverage_vector,
                     wh_w, ws_w, ws_b, wc_w, v_w, *, block_b=None):
    # TODO(synk): in a decoder loop, precompute encoder_features = encoder_output @ Wh
    # once per sequence and pass it in (drop Wh from the kernel); it is constant
    # across decoder timesteps.
    f32 = jnp.float32
    B, L, D = encoder_output.shape

    # Pad the sequence axis to a lane-dense multiple of 128 (padded cols masked out).
    Lp = int(pl.cdiv(L, 128)) * 128

    # Batch tile: target >= 512 MXU rows (block_b * Lp) per grid step; when the
    # batch axis is actually tiled keep block_b 8-aligned (sublane constraint).
    if block_b is None:
        block_b = max(1, 512 // Lp)
    block_b = min(block_b, B)
    if block_b < B and block_b % 8 != 0:
        block_b = max(8, (block_b // 8) * 8)
    Bp = int(pl.cdiv(B, block_b)) * block_b

    pad_b, pad_l = Bp - B, Lp - L
    enc_p = jnp.pad(encoder_output.astype(f32), ((0, pad_b), (0, pad_l), (0, 0)))
    s_p = jnp.pad(s_t.astype(f32), ((0, pad_b), (0, 0)))
    mask_p = jnp.pad(x_padding_masks.astype(f32), ((0, pad_b), (0, pad_l)))
    if pad_b:
        # Keep padded batch rows finite (avoid 0/0); they are sliced off below.
        mask_p = mask_p.at[B:, 0].set(1.0)
    cov_p = jnp.pad(coverage_vector.astype(f32), ((0, pad_b), (0, pad_l)))
    cov_col = cov_p[..., None]                     # (Bp, Lp, 1) column view for wc

    wh_bf = wh_w.astype(jnp.bfloat16)              # bf16 weights for the MXU
    ws_bf = ws_w.astype(jnp.bfloat16)

    grid = (Bp // block_b,)
    in_specs = [
        pl.BlockSpec((block_b, Lp, D), lambda b: (b, 0, 0)),   # encoder_output
        pl.BlockSpec((block_b, D), lambda b: (b, 0)),          # s_t
        pl.BlockSpec((block_b, Lp), lambda b: (b, 0)),         # padding mask
        pl.BlockSpec((block_b, Lp), lambda b: (b, 0)),         # coverage (row layout)
        pl.BlockSpec((block_b, Lp, 1), lambda b: (b, 0, 0)),   # coverage (column layout)
        pl.BlockSpec((D, D), lambda b: (0, 0)),                # Wh (bf16, pre-transposed)
        pl.BlockSpec((D, D), lambda b: (0, 0)),                # Ws (bf16, pre-transposed)
        pl.BlockSpec((1, D), lambda b: (0, 0)),                # Ws bias
        pl.BlockSpec((1, D), lambda b: (0, 0)),                # wc weight row
        pl.BlockSpec((1, D), lambda b: (0, 0)),                # v weight row
    ]
    out_specs = [
        pl.BlockSpec((block_b, D), lambda b: (b, 0)),          # context
        pl.BlockSpec((block_b, Lp), lambda b: (b, 0)),         # attention weights
        pl.BlockSpec((block_b, Lp), lambda b: (b, 0)),         # new coverage
    ]
    out_shape = [
        jax.ShapeDtypeStruct((Bp, D), f32),
        jax.ShapeDtypeStruct((Bp, Lp), f32),
        jax.ShapeDtypeStruct((Bp, Lp), f32),
    ]

    ctx, attn, new_cov = pl.pallas_call(
        attention_kernel,
        grid_spec=pltpu.PrefetchScalarGridSpec(
            num_scalar_prefetch=0,
            grid=grid,
            in_specs=in_specs,
            out_specs=out_specs,
        ),
        out_shape=out_shape,
        compiler_params=pltpu.CompilerParams(
            dimension_semantics=("parallel",),
            vmem_limit_bytes=64 * 1024 * 1024),
    )(enc_p, s_p, mask_p, cov_p, cov_col, wh_bf, ws_bf,
      ws_b.astype(f32), wc_w.astype(f32), v_w.astype(f32))

    return ctx[:B], attn[:B, :L], new_cov[:B, :L]


def attention_reference(encoder_output, s_t, mask, cov, wh_w, ws_w, ws_b, wc_w, v_w):
    # Pure-JAX reference mirroring the PyTorch forward (coverage enabled),
    # with the same bf16-operand / f32-accumulate matmul policy as the kernel.
    bf16 = jnp.bfloat16
    enc_feat = jnp.einsum('bld,de->ble', encoder_output.astype(bf16),
                          wh_w.astype(bf16), preferred_element_type=jnp.float32)
    dec_feat = jnp.einsum('bd,de->be', s_t.astype(bf16), ws_w.astype(bf16),
                          preferred_element_type=jnp.float32) + ws_b[0]
    cov_feat = cov[..., None] * wc_w[0][None, None, :]
    att = jnp.tanh(enc_feat + dec_feat[:, None, :] + cov_feat)
    score = jnp.sum(att * v_w[0][None, None, :], axis=-1)
    attn = jax.nn.softmax(score, axis=1)
    attn = attn * mask
    attn = attn / jnp.sum(attn, axis=1, keepdims=True)
    ctx = jnp.sum(attn[..., None] * encoder_output, axis=1)
    return ctx, attn, cov + attn


if __name__ == "__main__":
    B, H, L = 2, 16, 8
    D = 2 * H  # 32

    key = jax.random.PRNGKey(0)
    keys = jax.random.split(key, 9)

    # Inputs (decoder_states h,c each (1,B,H) -> concatenated feature dim)
    h_dec = jax.random.normal(keys[0], (1, B, H), jnp.float32)
    c_dec = jax.random.normal(keys[1], (1, B, H), jnp.float32)
    s_t = jnp.concatenate([h_dec, c_dec], axis=2)[0]          # (B, D)

    encoder_output = jax.random.normal(keys[2], (B, L, D), jnp.float32)
    x_padding_masks = (jax.random.uniform(keys[3], (B, L)) > 0.2).astype(jnp.float32)
    x_padding_masks = x_padding_masks.at[:, 0].set(1.0)        # avoid all-zero rows
    coverage_vector = jax.random.uniform(keys[4], (B, L), jnp.float32)

    # Parameters (deterministic init; stored transposed relative to torch Linear.weight)
    scale = 0.1
    wh_w = scale * jax.random.normal(keys[5], (D, D), jnp.float32)   # Wh:  y = x @ wh_w
    ws_w = scale * jax.random.normal(keys[6], (D, D), jnp.float32)   # Ws:  y = x @ ws_w + b
    ws_b = scale * jax.random.normal(keys[7], (1, D), jnp.float32)
    wc_w = scale * jax.random.normal(keys[8], (1, D), jnp.float32)   # wc: Linear(1, D)
    v_w = scale * jax.random.normal(jax.random.PRNGKey(42), (1, D), jnp.float32)  # v: Linear(D, 1)

    ctx, attn, new_cov = attention_pallas(
        encoder_output, s_t, x_padding_masks, coverage_vector,
        wh_w, ws_w, ws_b, wc_w, v_w)
    jax.block_until_ready((ctx, attn, new_cov))

    ctx_r, attn_r, cov_r = attention_reference(
        encoder_output, s_t, x_padding_masks, coverage_vector,
        wh_w, ws_w, ws_b, wc_w, v_w)

    assert jnp.allclose(ctx, ctx_r, atol=1e-4, rtol=1e-4), "context mismatch"
    assert jnp.allclose(attn, attn_r, atol=1e-4, rtol=1e-4), "attention mismatch"
    assert jnp.allclose(new_cov, cov_r, atol=1e-4, rtol=1e-4), "coverage mismatch"

    print("KERNEL_OK")
</pallas_src>

<mosaic_0001>
module attributes {stable_mosaic.version = 11 : i64} {
  func.func @attention_kernel(%arg0: i32, %arg1: memref<2x128x32xf32, #tpu.memory_space<vmem>>, %arg2: memref<2x32xf32, #tpu.memory_space<vmem>>, %arg3: memref<2x128xf32, #tpu.memory_space<vmem>>, %arg4: memref<2x128xf32, #tpu.memory_space<vmem>>, %arg5: memref<2x128x1xf32, #tpu.memory_space<vmem>>, %arg6: memref<32x32xbf16, #tpu.memory_space<vmem>>, %arg7: memref<32x32xbf16, #tpu.memory_space<vmem>>, %arg8: memref<1x32xf32, #tpu.memory_space<vmem>>, %arg9: memref<1x32xf32, #tpu.memory_space<vmem>>, %arg10: memref<1x32xf32, #tpu.memory_space<vmem>>, %arg11: memref<2x32xf32, #tpu.memory_space<vmem>>, %arg12: memref<2x128xf32, #tpu.memory_space<vmem>>, %arg13: memref<2x128xf32, #tpu.memory_space<vmem>>) attributes {dimension_semantics = [#tpu.dimension_semantics<parallel>], iteration_bounds = array<i64: 1>, scalar_prefetch = 0 : i64, scratch_operands = 0 : i64, tpu.core_type = #tpu.core_type<tc>, window_params = [{transform_indices = @transform_0, window_bounds = array<i64: 2, 128, 32>}, {transform_indices = @transform_1, window_bounds = array<i64: 2, 32>}, {transform_indices = @transform_2, window_bounds = array<i64: 2, 128>}, {transform_indices = @transform_3, window_bounds = array<i64: 2, 128>}, {transform_indices = @transform_4, window_bounds = array<i64: 2, 128, 1>}, {pipeline_mode = #tpu.pipeline_mode<synchronous>, transform_indices = @transform_5, window_bounds = array<i64: 32, 32>}, {pipeline_mode = #tpu.pipeline_mode<synchronous>, transform_indices = @transform_6, window_bounds = array<i64: 32, 32>}, {pipeline_mode = #tpu.pipeline_mode<synchronous>, transform_indices = @transform_7, window_bounds = array<i64: 1, 32>}, {pipeline_mode = #tpu.pipeline_mode<synchronous>, transform_indices = @transform_8, window_bounds = array<i64: 1, 32>}, {pipeline_mode = #tpu.pipeline_mode<synchronous>, transform_indices = @transform_9, window_bounds = array<i64: 1, 32>}, {transform_indices = @transform_10, window_bounds = array<i64: 2, 32>}, {transform_indices = @transform_11, window_bounds = array<i64: 2, 128>}, {transform_indices = @transform_12, window_bounds = array<i64: 2, 128>}]} {
    %c0 = arith.constant 0 : index
    %c0_0 = arith.constant 0 : index
    %c0_1 = arith.constant 0 : index
    %0 = vector.load %arg1[%c0, %c0_0, %c0_1] : memref<2x128x32xf32, #tpu.memory_space<vmem>>, vector<2x128x32xf32>
    %1 = vector.shape_cast %0 : vector<2x128x32xf32> to vector<256x32xf32>
    %2 = arith.truncf %1 : vector<256x32xf32> to vector<256x32xbf16>
    %c0_2 = arith.constant 0 : index
    %c0_3 = arith.constant 0 : index
    %3 = vector.load %arg6[%c0_2, %c0_3] : memref<32x32xbf16, #tpu.memory_space<vmem>>, vector<32x32xbf16>
    %cst = arith.constant dense<0.000000e+00> : vector<256x32xf32>
    %4 = tpu.matmul %2, %3, %cst {dimension_numbers = #tpu.dot_dimension_numbers<[1], [0], [0], [1], [0, 0, 1, 1], [], []>} : vector<256x32xbf16>, vector<32x32xbf16>, vector<256x32xf32> -> vector<256x32xf32>
    %5 = vector.shape_cast %4 : vector<256x32xf32> to vector<2x128x32xf32>
    %c0_4 = arith.constant 0 : index
    %c0_5 = arith.constant 0 : index
    %6 = vector.load %arg2[%c0_4, %c0_5] : memref<2x32xf32, #tpu.memory_space<vmem>>, vector<2x32xf32>
    %7 = arith.truncf %6 : vector<2x32xf32> to vector<2x32xbf16>
    %c0_6 = arith.constant 0 : index
    %c0_7 = arith.constant 0 : index
    %8 = vector.load %arg7[%c0_6, %c0_7] : memref<32x32xbf16, #tpu.memory_space<vmem>>, vector<32x32xbf16>
    %cst_8 = arith.constant dense<0.000000e+00> : vector<2x32xf32>
    %9 = tpu.matmul %7, %8, %cst_8 {dimension_numbers = #tpu.dot_dimension_numbers<[1], [0], [0], [1], [0, 0, 1, 1], [], []>} : vector<2x32xbf16>, vector<32x32xbf16>, vector<2x32xf32> -> vector<2x32xf32>
    %c0_9 = arith.constant 0 : index
    %c0_10 = arith.constant 0 : index
    %10 = vector.load %arg8[%c0_9, %c0_10] : memref<1x32xf32, #tpu.memory_space<vmem>>, vector<1x32xf32>
    %11 = vector.broadcast %10 : vector<1x32xf32> to vector<2x32xf32>
    %12 = arith.addf %9, %11 : vector<2x32xf32>
    %c0_11 = arith.constant 0 : index
    %c0_12 = arith.constant 0 : index
    %c0_13 = arith.constant 0 : index
    %13 = vector.load %arg5[%c0_11, %c0_12, %c0_13] : memref<2x128x1xf32, #tpu.memory_space<vmem>>, vector<2x128x1xf32>
    %c0_14 = arith.constant 0 : index
    %c0_15 = arith.constant 0 : index
    %14 = vector.load %arg9[%c0_14, %c0_15] : memref<1x32xf32, #tpu.memory_space<vmem>>, vector<1x32xf32>
    %15 = vector.shape_cast %14 : vector<1x32xf32> to vector<1x1x32xf32>
    %16 = vector.broadcast %13 : vector<2x128x1xf32> to vector<2x128x32xf32>
    %17 = vector.broadcast %15 : vector<1x1x32xf32> to vector<2x128x32xf32>
    %18 = arith.mulf %16, %17 : vector<2x128x32xf32>
    %19 = vector.shape_cast %12 : vector<2x32xf32> to vector<2x1x32xf32>
    %20 = vector.broadcast %19 : vector<2x1x32xf32> to vector<2x128x32xf32>
    %21 = arith.addf %5, %20 : vector<2x128x32xf32>
    %22 = arith.addf %21, %18 : vector<2x128x32xf32>
    %23 = math.tanh %22 : vector<2x128x32xf32>
    %c0_16 = arith.constant 0 : index
    %c0_17 = arith.constant 0 : index
    %24 = vector.load %arg10[%c0_16, %c0_17] : memref<1x32xf32, #tpu.memory_space<vmem>>, vector<1x32xf32>
    %25 = vector.shape_cast %24 : vector<1x32xf32> to vector<1x1x32xf32>
    %26 = vector.broadcast %25 : vector<1x1x32xf32> to vector<2x128x32xf32>
    %27 = arith.mulf %23, %26 : vector<2x128x32xf32>
    %cst_18 = arith.constant dense<0.000000e+00> : vector<2x128xf32>
    %28 = vector.multi_reduction <add>, %27, %cst_18 [2] : vector<2x128x32xf32> to vector<2x128xf32>
    %cst_19 = arith.constant dense<0xFF800000> : vector<2xf32>
    %29 = vector.multi_reduction <maximumf>, %28, %cst_19 [1] : vector<2x128xf32> to vector<2xf32>
    %30 = vector.shape_cast %29 : vector<2xf32> to vector<2x1xf32>
    %31 = vector.broadcast %30 : vector<2x1xf32> to vector<2x128xf32>
    %32 = arith.subf %28, %31 : vector<2x128xf32>
    %33 = math.exp %32 : vector<2x128xf32>
    %c0_20 = arith.constant 0 : index
    %c0_21 = arith.constant 0 : index
    %34 = vector.load %arg3[%c0_20, %c0_21] : memref<2x128xf32, #tpu.memory_space<vmem>>, vector<2x128xf32>
    %35 = arith.mulf %33, %34 : vector<2x128xf32>
    %cst_22 = arith.constant dense<0.000000e+00> : vector<2xf32>
    %36 = vector.multi_reduction <add>, %35, %cst_22 [1] : vector<2x128xf32> to vector<2xf32>
    %37 = vector.shape_cast %36 : vector<2xf32> to vector<2x1xf32>
    %38 = vector.broadcast %37 : vector<2x1xf32> to vector<2x128xf32>
    %39 = arith.divf %35, %38 : vector<2x128xf32>
    %40 = vector.shape_cast %39 : vector<2x128xf32> to vector<2x128x1xf32>
    %41 = vector.broadcast %40 : vector<2x128x1xf32> to vector<2x128x32xf32>
    %42 = arith.mulf %41, %0 : vector<2x128x32xf32>
    %cst_23 = arith.constant dense<0.000000e+00> : vector<2x32xf32>
    %43 = vector.multi_reduction <add>, %42, %cst_23 [1] : vector<2x128x32xf32> to vector<2x32xf32>
    %c0_24 = arith.constant 0 : index
    %c0_25 = arith.constant 0 : index
    %44 = vector.load %arg11[%c0_24, %c0_25] : memref<2x32xf32, #tpu.memory_space<vmem>>, vector<2x32xf32>
    tpu.vector_store %arg11[%c0_24, %c0_25], %43 {strides = array<i32>} : memref<2x32xf32, #tpu.memory_space<vmem>>, vector<2x32xf32>,
    %c0_26 = arith.constant 0 : index
    %c0_27 = arith.constant 0 : index
    %45 = vector.load %arg12[%c0_26, %c0_27] : memref<2x128xf32, #tpu.memory_space<vmem>>, vector<2x128xf32>
    tpu.vector_store %arg12[%c0_26, %c0_27], %39 {strides = array<i32>} : memref<2x128xf32, #tpu.memory_space<vmem>>, vector<2x128xf32>,
    %c0_28 = arith.constant 0 : index
    %c0_29 = arith.constant 0 : index
    %46 = vector.load %arg4[%c0_28, %c0_29] : memref<2x128xf32, #tpu.memory_space<vmem>>, vector<2x128xf32>
    %47 = arith.addf %46, %39 : vector<2x128xf32>
    %c0_30 = arith.constant 0 : index
    %c0_31 = arith.constant 0 : index
    %48 = vector.load %arg13[%c0_30, %c0_31] : memref<2x128xf32, #tpu.memory_space<vmem>>, vector<2x128xf32>
    tpu.vector_store %arg13[%c0_30, %c0_31], %47 {strides = array<i32>} : memref<2x128xf32, #tpu.memory_space<vmem>>, vector<2x128xf32>,
    return
  }
  func.func @transform_0(%arg0: i32) -> (i32, i32, i32) {
    %c0_i32 = arith.constant 0 : i32
    %c0_i32_0 = arith.constant 0 : i32
    %c0_i32_1 = arith.constant 0 : i32
    return %arg0, %c0_i32, %c0_i32_0 : i32, i32, i32
  }
  func.func @transform_1(%arg0: i32) -> (i32, i32) {
    %c0_i32 = arith.constant 0 : i32
    %c0_i32_0 = arith.constant 0 : i32
    return %arg0, %c0_i32 : i32, i32
  }
  func.func @transform_2(%arg0: i32) -> (i32, i32) {
    %c0_i32 = arith.constant 0 : i32
    %c0_i32_0 = arith.constant 0 : i32
    return %arg0, %c0_i32 : i32, i32
  }
  func.func @transform_3(%arg0: i32) -> (i32, i32) {
    %c0_i32 = arith.constant 0 : i32
    %c0_i32_0 = arith.constant 0 : i32
    return %arg0, %c0_i32 : i32, i32
  }
  func.func @transform_4(%arg0: i32) -> (i32, i32, i32) {
    %c0_i32 = arith.constant 0 : i32
    %c0_i32_0 = arith.constant 0 : i32
    %c0_i32_1 = arith.constant 0 : i32
    return %arg0, %c0_i32, %c0_i32_0 : i32, i32, i32
  }
  func.func @transform_5(%arg0: i32) -> (i32, i32) {
    %c0_i32 = arith.constant 0 : i32
    %c0_i32_0 = arith.constant 0 : i32
    %c0_i32_1 = arith.constant 0 : i32
    return %c0_i32, %c0_i32_0 : i32, i32
  }
  func.func @transform_6(%arg0: i32) -> (i32, i32) {
    %c0_i32 = arith.constant 0 : i32
    %c0_i32_0 = arith.constant 0 : i32
    %c0_i32_1 = arith.constant 0 : i32
    return %c0_i32, %c0_i32_0 : i32, i32
  }
  func.func @transform_7(%arg0: i32) -> (i32, i32) {
    %c0_i32 = arith.constant 0 : i32
    %c0_i32_0 = arith.constant 0 : i32
    %c0_i32_1 = arith.constant 0 : i32
    return %c0_i32, %c0_i32_0 : i32, i32
  }
  func.func @transform_8(%arg0: i32) -> (i32, i32) {
    %c0_i32 = arith.constant 0 : i32
    %c0_i32_0 = arith.constant 0 : i32
    %c0_i32_1 = arith.constant 0 : i32
    return %c0_i32, %c0_i32_0 : i32, i32
  }
  func.func @transform_9(%arg0: i32) -> (i32, i32) {
    %c0_i32 = arith.constant 0 : i32
    %c0_i32_0 = arith.constant 0 : i32
    %c0_i32_1 = arith.constant 0 : i32
    return %c0_i32, %c0_i32_0 : i32, i32
  }
  func.func @transform_10(%arg0: i32) -> (i32, i32) {
    %c0_i32 = arith.constant 0 : i32
    %c0_i32_0 = arith.constant 0 : i32
    return %arg0, %c0_i32 : i32, i32
  }
  func.func @transform_11(%arg0: i32) -> (i32, i32) {
    %c0_i32 = arith.constant 0 : i32
    %c0_i32_0 = arith.constant 0 : i32
    return %arg0, %c0_i32 : i32, i32
  }
  func.func @transform_12(%arg0: i32) -> (i32, i32) {
    %c0_i32 = arith.constant 0 : i32
    %c0_i32_0 = arith.constant 0 : i32
    return %arg0, %c0_i32 : i32, i32
  }
}

</mosaic_0001>

<bundles_post_ra>
// kernel: tpu_custom_call.1
= control target key start
LH: loop header
LB: loop body
LE: loop exit
PB: predicated region body
PF: predicated region fallthrough
CT: control target
= control target key end

     0   :  { %18 = vsyncpa [#allocation3], 0  ;;  %s4279_s0 = inlined_call_operand.hbm [shape: f32[2,128,32], index: 0, kind: input, shape index: {}]   ;;  %s4280_s1 = inlined_call_operand.hbm [shape: f32[2,32], index: 1, kind: input, shape index: {}]   ;;  %s4281_s2 = inlined_call_operand.hbm [shape: f32[2,128], index: 2, kind: input, shape index: {}]   ;;  %s4282_s3 = inlined_call_operand.hbm [shape: f32[2,128], index: 3, kind: input, shape index: {}]   ;;  %s4283_s4 = inlined_call_operand.hbm [shape: f32[2,128,1], index: 4, kind: input, shape index: {}]   ;;  %s4284_s5 = inlined_call_operand.hbm [shape: bf16[32,32], index: 5, kind: input, shape index: {}]   ;;  %s4285_s6 = inlined_call_operand.hbm [shape: bf16[32,32], index: 6, kind: input, shape index: {}]   ;;  %s4286_s7 = inlined_call_operand.hbm [shape: f32[1,32], index: 7, kind: input, shape index: {}]   ;;  %s4287_s8 = inlined_call_operand.hbm [shape: f32[1,32], index: 8, kind: input, shape index: {}]   ;;  %s4288_s9 = inlined_call_operand.hbm [shape: f32[1,32], index: 9, kind: input, shape index: {}]   ;;  %s4289_s10 = inlined_call_operand.hbm [shape: f32[2,32], index: 10, kind: output, shape index: {0}]   ;;  %s4290_s11 = inlined_call_operand.hbm [shape: f32[2,128], index: 11, kind: output, shape index: {1}]   ;;  %s4291_s12 = inlined_call_operand.hbm [shape: f32[2,128], index: 12, kind: output, shape index: {2}]  }
   0x1   :  { %19 = vsyncpa [#allocation6], 0 }
   0x2   :  { %20 = vsyncpa [#allocation9], 0 }
   0x3   :  { %21 = vsyncpa [#allocation12], 0 }
   0x4   :  { %22 = vsyncpa [#allocation15], 0 }
   0x5   :  { %23 = vsyncpa [#allocation18], 0 }
   0x6   :  { %24 = vsyncpa [#allocation4], 0 }
   0x7   :  { %25 = vsyncpa [#allocation21], 0  ;;  %s2943_s21 = smov [#allocation5]   ;;  %s2944_s23 = smov [#allocation8]  }
   0x8   :  { %s44_s22 = sshll.u32 %s2943_s21, 4  ;;  %s64_s24 = sshll.u32 %s2944_s23, 4  ;;  %s45_s22 = int_to_ptr.vmem [resolvable:$true] %s44_s22  ;;  %s65_s24 = int_to_ptr.vmem [resolvable:$true] %s64_s24 }
   0x9   :  { %s2641_s27 = scalar_lea.hbm %s4280_s1, 32 }
   0xa   :  { %p2642_p0 = scmp.ne.s32.totalorder %s4280_s1, %s2641_s27  ;;  %p2645_p1 = scmp.lt.u32.totalorder %s2641_s27, %s4280_s1 }
   0xc   :  { %p2647_p2 = pnand %p2645_p1, %p2642_p0 }
   0xe   :  { %2650 = shalt.err (!%p2647_p2)
}
   0xf   :  { %s2651_s14 = scalar_lea.vmem %s45_s22, 32  ;;  %p2656_p4 = scmp.lt.s32.totalorder %s45_s22, %s45_s22 }
  0x10   :  { %p2652_p3 = scmp.ne.s32.totalorder %s45_s22, %s2651_s14  ;;  %p2657_p5 = scmp.lt.s32.totalorder %s2651_s14, %s2651_s14 }
  0x12   :  { %p2658_p6 = por %p2657_p5, %p2656_p4 }
  0x14   :  { %p2659_p7 = pnand %p2658_p6, %p2652_p3 }
  0x16   :  { %2662 = shalt.err (!%p2659_p7)
}
  0x17   :  { %47 = dma.hbm_to_vmem [thread:$0]  %s4280_s1, 32, %s45_s22, [#allocation6]  }
  0x18   :  { %s2663_s19 = scalar_lea.hbm %s4282_s3, 32 }
  0x19   :  { %p2664_p8 = scmp.ne.s32.totalorder %s4282_s3, %s2663_s19  ;;  %p2667_p9 = scmp.lt.u32.totalorder %s2663_s19, %s4282_s3 }
  0x1b   :  { %p2669_p10 = pnand %p2667_p9, %p2664_p8 }
  0x1d   :  { %2672 = shalt.err (!%p2669_p10)
}
  0x1e   :  { %s2673_s26 = scalar_lea.vmem %s65_s24, 32  ;;  %p2678_p12 = scmp.lt.s32.totalorder %s65_s24, %s65_s24 }
  0x1f   :  { %p2674_p11 = scmp.ne.s32.totalorder %s65_s24, %s2673_s26  ;;  %p2679_p13 = scmp.lt.s32.totalorder %s2673_s26, %s2673_s26 }
  0x21   :  { %p2680_p0 = por %p2679_p13, %p2678_p12 }
  0x23   :  { %p2681_p1 = pnand %p2680_p0, %p2674_p11 }
  0x25   :  { %2684 = shalt.err (!%p2681_p1)
}
  0x26   :  { %67 = dma.hbm_to_vmem [thread:$0]  %s4282_s3, 32, %s65_s24, [#allocation9]  }
  0x27   :  { %s2945_s27 = smov [#allocation11]   ;;  %s2685_s13 = scalar_lea.hbm %s4284_s5, 256 }
  0x28   :  { %s85_s28 = sshll.u32 %s2945_s27, 4  ;;  %p2686_p2 = scmp.ne.s32.totalorder %s4284_s5, %s2685_s13  ;;  %s86_s28 = int_to_ptr.vmem [resolvable:$true] %s85_s28 }
  0x29   :  { %p2689_p3 = scmp.lt.u32.totalorder %s2685_s13, %s4284_s5 }
  0x2b   :  { %p2691_p4 = pnand %p2689_p3, %p2686_p2 }
  0x2d   :  { %2694 = shalt.err (!%p2691_p4)
}
  0x2e   :  { %s2695_s18 = scalar_lea.vmem %s86_s28, 256  ;;  %p2700_p6 = scmp.lt.s32.totalorder %s86_s28, %s86_s28 }
  0x2f   :  { %p2696_p5 = scmp.ne.s32.totalorder %s86_s28, %s2695_s18  ;;  %p2701_p7 = scmp.lt.s32.totalorder %s2695_s18, %s2695_s18 }
  0x31   :  { %p2702_p8 = por %p2701_p7, %p2700_p6 }
  0x33   :  { %p2703_p9 = pnand %p2702_p8, %p2696_p5 }
  0x35   :  { %2706 = shalt.err (!%p2703_p9)
}
  0x36   :  { %s2946_s3 = smov 64   ;;  %s2947_s24 = smov 4  }
  0x37   :  { %91 = dma.hbm_to_vmem [thread:$0]  %s4284_s5, 256, %s86_s28, [#allocation12], %s2946_s3, %s2946_s3, %s2947_s24  }
  0x38   :  { %s2948_s21 = smov [#allocation14]   ;;  %s2949_s25 = smov [#allocation2]  }
  0x39   :  { %s110_s23 = sshll.u32 %s2948_s21, 4  ;;  %s31_s26 = sshll.u32 %s2949_s25, 4  ;;  %s111_s23 = int_to_ptr.vmem [resolvable:$true] %s110_s23  ;;  %s32_s26 = int_to_ptr.vmem [resolvable:$true] %s31_s26 }
  0x3a   :  { %s2707_s27 = scalar_lea.hbm %s4286_s7, 16 }
  0x3b   :  { %p2708_p10 = scmp.ne.s32.totalorder %s4286_s7, %s2707_s27  ;;  %p2711_p11 = scmp.lt.u32.totalorder %s2707_s27, %s4286_s7 }
  0x3d   :  { %p2713_p12 = pnand %p2711_p11, %p2708_p10 }
  0x3f   :  { %2716 = shalt.err (!%p2713_p12)
}
  0x40   :  { %s2717_s5 = scalar_lea.vmem %s111_s23, 16  ;;  %s2721_s28 = scalar_lea.vmem %s111_s23, 32 }
  0x41   :  { %p2718_p13 = scmp.ne.s32.totalorder %s111_s23, %s2717_s5  ;;  %p2722_p0 = scmp.lt.s32.totalorder %s111_s23, %s111_s23 }
  0x42   :  { %p2723_p1 = scmp.lt.s32.totalorder %s2721_s28, %s2717_s5 }
  0x44   :  { %p2724_p2 = por %p2723_p1, %p2722_p0 }
  0x46   :  { %p2725_p3 = pnand %p2724_p2, %p2718_p13 }
  0x48   :  { %2728 = shalt.err (!%p2725_p3)
}
  0x49   :  { %113 = dma.hbm_to_vmem [thread:$0]  %s4286_s7, 16, %s111_s23, [#allocation15]  }
  0x4a   :  { %s2729_s19 = scalar_lea.hbm %s4279_s0, 4096 }
  0x4b   :  { %p2730_p4 = scmp.ne.s32.totalorder %s4279_s0, %s2729_s19  ;;  %p2733_p5 = scmp.lt.u32.totalorder %s2729_s19, %s4279_s0 }
  0x4d   :  { %p2735_p6 = pnand %p2733_p5, %p2730_p4 }
  0x4f   :  { %2738 = shalt.err (!%p2735_p6)
}
  0x50   :  { %s2739_s22 = scalar_lea.vmem %s32_s26, 4096  ;;  %p2744_p8 = scmp.lt.s32.totalorder %s32_s26, %s32_s26 }
  0x51   :  { %p2740_p7 = scmp.ne.s32.totalorder %s32_s26, %s2739_s22  ;;  %p2745_p9 = scmp.lt.s32.totalorder %s2739_s22, %s2739_s22 }
  0x53   :  { %p2746_p10 = por %p2745_p9, %p2744_p8 }
  0x55   :  { %p2747_p11 = pnand %p2746_p10, %p2740_p7 }
  0x57   :  { %2750 = shalt.err (!%p2747_p11)
}
  0x58   :  { %s2950_s7 = smov 128   ;;  %s2951_s23 = smov 8  }
  0x59   :  { %37 = dma.hbm_to_vmem [thread:$0]  %s4279_s0, 4096, %s32_s26, [#allocation3], %s2950_s7, %s2950_s7, %s2951_s23  }
  0x5a   :  { %s2952_s30 = smov [#allocation7]   ;;  %s2953_s14 = smov [#allocation10]  }
  0x5b   :  { %s54_s13 = sshll.u32 %s2952_s30, 4  ;;  %s73_s5 = sshll.u32 %s2953_s14, 4  ;;  %s55_s13 = int_to_ptr.vmem [resolvable:$true] %s54_s13  ;;  %s74_s5 = int_to_ptr.vmem [resolvable:$true] %s73_s5 }
  0x5c   :  { %s2751_s16 = scalar_lea.hbm %s4281_s2, 32 }
  0x5d   :  { %p2752_p12 = scmp.ne.s32.totalorder %s4281_s2, %s2751_s16  ;;  %p2755_p13 = scmp.lt.u32.totalorder %s2751_s16, %s4281_s2 }
  0x5f   :  { %p2757_p0 = pnand %p2755_p13, %p2752_p12 }
  0x61   :  { %2760 = shalt.err (!%p2757_p0)
}
  0x62   :  { %s2761_s0 = scalar_lea.vmem %s55_s13, 32  ;;  %p2766_p2 = scmp.lt.s32.totalorder %s55_s13, %s55_s13 }
  0x63   :  { %p2762_p1 = scmp.ne.s32.totalorder %s55_s13, %s2761_s0  ;;  %p2767_p3 = scmp.lt.s32.totalorder %s2761_s0, %s2761_s0 }
  0x65   :  { %p2768_p4 = por %p2767_p3, %p2766_p2 }
  0x67   :  { %p2769_p5 = pnand %p2768_p4, %p2762_p1 }
  0x69   :  { %2772 = shalt.err (!%p2769_p5)
}
  0x6a   :  { %57 = dma.hbm_to_vmem [thread:$0]  %s4281_s2, 32, %s55_s13, [#allocation6]  }
  0x6b   :  { %s2773_s22 = scalar_lea.hbm %s4283_s4, 4096 }
  0x6c   :  { %p2774_p6 = scmp.ne.s32.totalorder %s4283_s4, %s2773_s22  ;;  %p2777_p7 = scmp.lt.u32.totalorder %s2773_s22, %s4283_s4 }
  0x6e   :  { %p2779_p8 = pnand %p2777_p7, %p2774_p6 }
  0x70   :  { %2782 = shalt.err (!%p2779_p8)
}
  0x71   :  { %s2783_s28 = scalar_lea.vmem %s74_s5, 4096  ;;  %p2788_p10 = scmp.lt.s32.totalorder %s74_s5, %s74_s5 }
  0x72   :  { %p2784_p9 = scmp.ne.s32.totalorder %s74_s5, %s2783_s28  ;;  %p2789_p11 = scmp.lt.s32.totalorder %s2783_s28, %s2783_s28 }
  0x74   :  { %p2790_p12 = por %p2789_p11, %p2788_p10 }
  0x76   :  { %p2791_p13 = pnand %p2790_p12, %p2784_p9 }
  0x78   :  { %2794 = shalt.err (!%p2791_p13)
}
  0x79   :  { %79 = dma.hbm_to_vmem [thread:$0]  %s4283_s4, 4096, %s74_s5, [#allocation9], %s2950_s7, %s2950_s7, %s2951_s23  }
  0x7a   :  { %s2954_s15 = smov [#allocation13]   ;;  %s2955_s17 = smov [#allocation16]  }
  0x7b   :  { %s97_s16 = sshll.u32 %s2954_s15, 4  ;;  %s120_s18 = sshll.u32 %s2955_s17, 4  ;;  %s98_s16 = int_to_ptr.vmem [resolvable:$true] %s97_s16  ;;  %s121_s18 = int_to_ptr.vmem [resolvable:$true] %s120_s18 }
  0x7c   :  { %s2795_s0 = scalar_lea.hbm %s4285_s6, 256 }
  0x7d   :  { %p2796_p0 = scmp.ne.s32.totalorder %s4285_s6, %s2795_s0  ;;  %p2799_p1 = scmp.lt.u32.totalorder %s2795_s0, %s4285_s6 }
  0x7f   :  { %p2801_p2 = pnand %p2799_p1, %p2796_p0 }
  0x81   :  { %2804 = shalt.err (!%p2801_p2)
}
  0x82   :  { %s2805_s4 = scalar_lea.vmem %s98_s16, 256  ;;  %p2810_p4 = scmp.lt.s32.totalorder %s98_s16, %s98_s16 }
  0x83   :  { %p2806_p3 = scmp.ne.s32.totalorder %s98_s16, %s2805_s4  ;;  %p2811_p5 = scmp.lt.s32.totalorder %s2805_s4, %s2805_s4 }
  0x85   :  { %p2812_p6 = por %p2811_p5, %p2810_p4 }
  0x87   :  { %p2813_p7 = pnand %p2812_p6, %p2806_p3 }
  0x89   :  { %2816 = shalt.err (!%p2813_p7)
}
  0x8a   :  { %103 = dma.hbm_to_vmem [thread:$0]  %s4285_s6, 256, %s98_s16, [#allocation12], %s2946_s3, %s2946_s3, %s2947_s24  }
  0x8b   :  { %s2817_s27 = scalar_lea.hbm %s4287_s8, 16 }
  0x8c   :  { %p2818_p8 = scmp.ne.s32.totalorder %s4287_s8, %s2817_s27  ;;  %p2821_p9 = scmp.lt.u32.totalorder %s2817_s27, %s4287_s8 }
  0x8e   :  { %p2823_p10 = pnand %p2821_p9, %p2818_p8 }
  0x90   :  { %2826 = shalt.err (!%p2823_p10)
}
  0x91   :  { %s2827_s2 = scalar_lea.vmem %s121_s18, 16  ;;  %s2831_s13 = scalar_lea.vmem %s121_s18, 32 }
  0x92   :  { %p2828_p11 = scmp.ne.s32.totalorder %s121_s18, %s2827_s2  ;;  %p2832_p12 = scmp.lt.s32.totalorder %s121_s18, %s121_s18 }
  0x93   :  { %p2833_p13 = scmp.lt.s32.totalorder %s2831_s13, %s2827_s2 }
  0x95   :  { %p2834_p0 = por %p2833_p13, %p2832_p12 }
  0x97   :  { %p2835_p1 = pnand %p2834_p0, %p2828_p11 }
  0x99   :  { %2838 = shalt.err (!%p2835_p1)
}
  0x9a   :  { %123 = dma.hbm_to_vmem [thread:$0]  %s4287_s8, 16, %s121_s18, [#allocation15]  }
  0x9b   :  { %s2956_s24 = smov [#allocation17]   ;;  %s2839_s19 = scalar_lea.hbm %s4288_s9, 16 }
  0x9c   :  { %s130_s15 = sshll.u32 %s2956_s24, 4  ;;  %p2840_p2 = scmp.ne.s32.totalorder %s4288_s9, %s2839_s19  ;;  %s131_s15 = int_to_ptr.vmem [resolvable:$true] %s130_s15 }
  0x9d   :  { %p2843_p3 = scmp.lt.u32.totalorder %s2839_s19, %s4288_s9 }
  0x9f   :  { %p2845_p4 = pnand %p2843_p3, %p2840_p2 }
  0xa1   :  { %2848 = shalt.err (!%p2845_p4)
}
  0xa2   :  { %s2849_s25 = scalar_lea.vmem %s131_s15, 16  ;;  %s2853_s8 = scalar_lea.vmem %s131_s15, 32 }
  0xa3   :  { %p2850_p5 = scmp.ne.s32.totalorder %s131_s15, %s2849_s25  ;;  %p2854_p6 = scmp.lt.s32.totalorder %s131_s15, %s131_s15 }
  0xa4   :  { %p2855_p7 = scmp.lt.s32.totalorder %s2853_s8, %s2849_s25 }
  0xa6   :  { %p2856_p8 = por %p2855_p7, %p2854_p6 }
  0xa8   :  { %p2857_p9 = pnand %p2856_p8, %p2850_p5 }
  0xaa   :  { %2860 = shalt.err (!%p2857_p9)
}
  0xab   :  { %133 = dma.hbm_to_vmem [thread:$0]  %s4288_s9, 16, %s131_s15, [#allocation18]  }
  0xac   :  { %2927 = dma.done.wait [#allocation3], 4096  }
  0xad   :  { %2928 = vsyncadd [#allocation3], 4294963200 }
  0xae   :  { %2929 = dma.done.wait [#allocation6], 64  }
  0xaf   :  { %2930 = vsyncadd [#allocation6], 4294967232 }
  0xb0   :  { %2931 = dma.done.wait [#allocation9], 4128  }
  0xb1   :  { %2932 = vsyncadd [#allocation9], 4294963168 }
  0xb2   :  { %2933 = dma.done.wait [#allocation12], 512  }
  0xb3   :  { %2934 = vsyncadd [#allocation12], 4294966784 }
  0xb4   :  { %2935 = dma.done.wait [#allocation15], 32  }
  0xb5   :  { %2936 = vsyncadd [#allocation15], 4294967264 }
  0xb6   :  { %2937 = dma.done.wait [#allocation18], 16  }
  0xb7   :  { %2938 = vsyncadd [#allocation18], 4294967280  ;;  %v2957_v0 = vmov 0   ;;  %v2473_v1 = vld [vmem:[#allocation11] sm:$0xff]   ;;  %v2474_v2 = vld [vmem:[#allocation11 + $0x8] sm:$0xff]   ;;  %vm4303_vm0 = vcmask 261120  }
  0xb8   :  { %2471 = vset.pattern.permute.xlu0 %v2957_v0  ;;  %2472 = vset.pattern.permute.xlu1 %v2957_v0  ;;  %v165_v3 = vld [vmem:[#allocation2] sm:$0xff]  ;;  %v166_v4 = vld [vmem:[#allocation2 + $0x8] sm:$0xff]  ;;  %v167_v8 = vld [vmem:[#allocation2 + $0x10] sm:$0xff]  ;;  %v2958_v21 = vmov 0.0   ;;  %vm2959_vm1 = vmmov 0   ;;  %vm1045_vm2 = vcmask 130112  }
  0xb9   :  { %2402 = vmatprep.subr.bf16.mxu0 %v2473_v1  ;;  %2446 = vmatprep.subr.bf16.mxu1 %v2473_v1  ;;  %v185_v5 = vld [vmem:[#allocation2 + $0xa0] sm:$0xff]  ;;  %v197_v6 = vpack.c.bf16 %v166_v4, %v165_v3  ;;  %v186_v7 = vld [vmem:[#allocation2 + $0xa8] sm:$0xff]  ;;  %v168_v9 = vld [vmem:[#allocation2 + $0x18] sm:$0xff]  ;;  %vm1052_vm3 = vcmask 195712   ;;  %vm1059_vm4 = vcmask 261312   ;;  %vm1066_vm5 = vcmask 326912  }
  0xba   :  { %2403 = vmatpush3.bf16.msra.mxu0 %v2473_v1  ;;  %2448 = vmatpush3.bf16.msra.mxu1 %v2473_v1  ;;  %v207_v10 = vpack.c.bf16 %v186_v7, %v185_v5  ;;  %v187_v11 = vld [vmem:[#allocation2 + $0xb0] sm:$0xff]  ;;  %v188_v12 = vld [vmem:[#allocation2 + $0xb8] sm:$0xff]  ;;  %v169_v13 = vld [vmem:[#allocation2 + $0x20] sm:$0xff]  ;;  %v198_v14 = vpack.c.bf16 %v168_v9, %v167_v8  ;;  %vm1073_vm6 = vcmask 392512   ;;  %vm1080_vm7 = vcmask 458112   ;;  %s2961_s9 = smov [#allocation20]  }
  0xbb   :  { %2404 = vmatprep.subr.bf16.mxu0 %v2474_v2  ;;  %2447 = vmatprep.subr.bf16.mxu1 %v2474_v2  ;;  %v208_v15 = vpack.c.bf16 %v188_v12, %v187_v11  ;;  %v170_v16 = vld [vmem:[#allocation2 + $0x28] sm:$0xff]  ;;  %v189_v17 = vld [vmem:[#allocation2 + $0xc0] sm:$0xff]  ;;  %v2475_v19 = vld [vmem:[#allocation13] sm:$0xff]   ;;  %vm4339_vm8 = vcmask 523712   ;;  %vm4340_vm9 = vcmask 589312   ;;  %vm1101_vm10 = vcmask 654912  }
  0xbc   :  { %2406 = vmatprep.mubr.msk.bf16.mxu0 %vm4303_vm0, %v197_v6  ;;  %2426 = vmatprep.mubr.msk.bf16.mxu1 %vm4303_vm0, %v207_v10  ;;  %v190_v18 = vld [vmem:[#allocation2 + $0xc8] sm:$0xff]  ;;  %v199_v20 = vpack.c.bf16 %v170_v16, %v169_v13  ;;  %v171_v23 = vld [vmem:[#allocation2 + $0x30] sm:$0xff]  ;;  %v172_v24 = vld [vmem:[#allocation2 + $0x38] sm:$0xff]  ;;  %vm1108_vm11 = vcmask 720512   ;;  %vm4304_vm12 = vcmask 786112   ;;  %vm1122_vm13 = vcmask 851712  }
  0xbd   :  { %v209_v22 = vpack.c.bf16 %v190_v18, %v189_v17  ;;  %v191_v25 = vld [vmem:[#allocation2 + $0xd0] sm:$0xff]  ;;  %v192_v26 = vld [vmem:[#allocation2 + $0xd8] sm:$0xff]  ;;  %v173_v28 = vld [vmem:[#allocation2 + $0x40] sm:$0xff]  ;;  %v200_v32 = vpack.c.bf16 %v172_v24, %v171_v23  ;;  %vm1129_vm14 = vcmask 917312   ;;  %vm1136_vm15 = vcmask 982912   ;;  %s2326_s4 = sshll.u32 %s2961_s9, 4  ;;  %s2327_s4 = int_to_ptr.vmem [resolvable:$true] %s2326_s4 }
  0xbe   :  { %2405 = vmatpush3.bf16.msra.mxu0 %v2474_v2  ;;  %2449 = vmatpush3.bf16.msra.mxu1 %v2474_v2  ;;  %v2476_v27 = vld [vmem:[#allocation13 + $0x8] sm:$0xff]   ;;  %v174_v29 = vld [vmem:[#allocation2 + $0x48] sm:$0xff]  ;;  %v210_v33 = vpack.c.bf16 %v192_v26, %v191_v25  ;;  %v509_v37 = vld [vmem:[#allocation10 + $0x10] sm:$0xff]  ;;  %s2962_s7 = smov [#allocation22]   ;;  %s2861_s5 = scalar_lea.vmem %s2327_s4, 32 }
  0xbf   :  { %2438 = vmatprep.subr.bf16.mxu1 %v2958_v21  ;;  %v193_v30 = vld [vmem:[#allocation2 + $0xe0] sm:$0xff]  ;;  %v194_v31 = vld [vmem:[#allocation2 + $0xe8] sm:$0xff]  ;;  %v201_v34 = vpack.c.bf16 %v174_v29, %v173_v28  ;;  %552 = vperm.xlu1 %2472, %v509_v37   ;;  %v175_v40 = vld [vmem:[#allocation2 + $0x50] sm:$0xff]  ;;  %s2336_s23 = sshll.u32 %s2962_s7, 4  ;;  %p2862_p10 = scmp.ne.s32.totalorder %s2327_s4, %s2861_s5  ;;  %s4235_s23 = int_to_ptr.vmem [resolvable:$true] %s2336_s23 }
  0xc0   :  { %v211_v35 = vpack.c.bf16 %v194_v31, %v193_v30  ;;  %v507_v36 = vld [vmem:[#allocation10] sm:$0xff]  ;;  %v508_v38 = vld [vmem:[#allocation10 + $0x8] sm:$0xff]  ;;  %v510_v39 = vld [vmem:[#allocation10 + $0x18] sm:$0xff]  ;;  %p2866_p11 = scmp.lt.s32.totalorder %s2327_s4, %s2327_s4  ;;  %p2867_p12 = scmp.lt.s32.totalorder %s2861_s5, %s2861_s5 }
  0xc1   :  { %2407 = vmatmul.mubr.msk.bf16.vlgmr.msra.gmra.mrb[0].mxu0 %vm4303_vm0, %v198_v14  ;;  %2427 = vmatmul.mubr.msk.bf16.vlgmr.msra.gmra.mrb[0].mxu1 %vm4303_vm0, %v208_v15  ;;  %v176_v41 = vld [vmem:[#allocation2 + $0x58] sm:$0xff]  ;;  %v195_v42 = vld [vmem:[#allocation2 + $0xf0] sm:$0xff]  ;;  %v177_v44 = vld [vmem:[#allocation2 + $0x60] sm:$0xff] }
  0xc2   :  { %2439 = vmatpush3.bf16.msra.mxu1 %v2475_v19  ;;  %2410 = vmatprep.mubr.msk.bf16.mxu0 %vm4303_vm0, %v199_v20  ;;  %v196_v43 = vld [vmem:[#allocation2 + $0xf8] sm:$0xff]  ;;  %v178_v45 = vld [vmem:[#allocation2 + $0x68] sm:$0xff]  ;;  %v202_v48 = vpack.c.bf16 %v176_v41, %v175_v40  ;;  %v179_v53 = vld [vmem:[#allocation2 + $0x70] sm:$0xff]  ;;  %p2868_p13 = por %p2867_p12, %p2866_p11 }
  0xc3   :  { %2430 = vmatprep.mubr.msk.bf16.mxu1 %vm4303_vm0, %v209_v22  ;;  %2440 = vmatprep.subr.bf16.mxu1 %v2958_v21  ;;  %v511_v46 = vld [vmem:[#allocation10 + $0x20] sm:$0xff]  ;;  %v512_v47 = vld [vmem:[#allocation10 + $0x28] sm:$0xff]  ;;  %v212_v49 = vpack.c.bf16 %v196_v43, %v195_v42  ;;  %v203_v50 = vpack.c.bf16 %v178_v45, %v177_v44  ;;  %v180_v54 = vld [vmem:[#allocation2 + $0x78] sm:$0xff] }
  0xc4   :  { %542 = vperm.xlu0 %2471, %v507_v36   ;;  %557 = vperm.xlu1 %2472, %v510_v39   ;;  %v523_v51 = vld [vmem:[#allocation10 + $0x80] sm:$0xff]  ;;  %v524_v52 = vld [vmem:[#allocation10 + $0x88] sm:$0xff]  ;;  %v439_v55 = vld [vmem:[#allocation5] sm:$0x3]  ;;  %v204_v60 = vpack.c.bf16 %v180_v54, %v179_v53  ;;  %p2869_p0 = pnand %p2868_p13, %p2862_p10 }
  0xc5   :  { %v181_v56 = vld [vmem:[#allocation2 + $0x80] sm:$0xff]  ;;  %v182_v57 = vld [vmem:[#allocation2 + $0x88] sm:$0xff]  ;;  %v525_v58 = vld [vmem:[#allocation10 + $0x90] sm:$0xff]  ;;  %v440_v61 = vpack.c.bf16 %v439_v55, %v439_v55 }
  0xc6   :  { %2441 = vmatpush3.bf16.msra.mxu1 %v2476_v27  ;;  %v526_v59 = vld [vmem:[#allocation10 + $0x98] sm:$0xff]  ;;  %v205_v62 = vpack.c.bf16 %v182_v57, %v181_v56  ;;  %v527_v63 = vld [vmem:[#allocation10 + $0xa0] sm:$0xff]  ;;  %v528_v0 = vld [vmem:[#allocation10 + $0xa8] sm:$0xff] }
  0xc7   :  { %v183_v1 = vld [vmem:[#allocation2 + $0x90] sm:$0xff]  ;;  %v184_v2 = vld [vmem:[#allocation2 + $0x98] sm:$0xff]  ;;  %v515_v8 = vld [vmem:[#allocation10 + $0x40] sm:$0xff] }
  0xc8   :  { %547 = vperm.xlu0 %2471, %v508_v38   ;;  %567 = vperm.xlu1 %2472, %v512_v47   ;;  %v513_v3 = vld [vmem:[#allocation10 + $0x30] sm:$0xff]  ;;  %v206_v5 = vpack.c.bf16 %v184_v2, %v183_v1  ;;  %v514_v6 = vld [vmem:[#allocation10 + $0x38] sm:$0xff]  ;;  %v531_v9 = vld [vmem:[#allocation10 + $0xc0] sm:$0xff] }
  0xc9   :  { %2411 = vmatmul.mubr.msk.bf16.gmra.mrb[4].mxu0 %vm4303_vm0, %v200_v32  ;;  %2431 = vmatmul.mubr.msk.bf16.gmra.mrb[4].mxu1 %vm4303_vm0, %v210_v33  ;;  %v529_v4 = vld [vmem:[#allocation10 + $0xb0] sm:$0xff]  ;;  %v530_v7 = vld [vmem:[#allocation10 + $0xb8] sm:$0xff]  ;;  %v516_v10 = vld [vmem:[#allocation10 + $0x48] sm:$0xff] }
  0xca   :  { %2414 = vmatprep.mubr.msk.bf16.mxu0 %vm4303_vm0, %v201_v34  ;;  %2434 = vmatprep.mubr.msk.bf16.mxu1 %vm4303_vm0, %v211_v35  ;;  %v532_v11 = vld [vmem:[#allocation10 + $0xc8] sm:$0xff]  ;;  %v517_v12 = vld [vmem:[#allocation10 + $0x50] sm:$0xff]  ;;  %v518_v14 = vld [vmem:[#allocation10 + $0x58] sm:$0xff] }
  0xcb   :  { %v533_v13 = vld [vmem:[#allocation10 + $0xd0] sm:$0xff]  ;;  %v534_v15 = vld [vmem:[#allocation10 + $0xd8] sm:$0xff]  ;;  %v519_v16 = vld [vmem:[#allocation10 + $0x60] sm:$0xff] }
  0xcc   :  { %562 = vperm.xlu0 %2471, %v511_v46   ;;  %627 = vperm.xlu1 %2472, %v524_v52   ;;  %v535_v17 = vld [vmem:[#allocation10 + $0xe0] sm:$0xff]  ;;  %v520_v18 = vld [vmem:[#allocation10 + $0x68] sm:$0xff]  ;;  %v521_v20 = vld [vmem:[#allocation10 + $0x70] sm:$0xff] }
  0xcd   :  { %v536_v19 = vld [vmem:[#allocation10 + $0xe8] sm:$0xff]  ;;  %v522_v22 = vld [vmem:[#allocation10 + $0x78] sm:$0xff] }
  0xce   :  { %v538_v23 = vld [vmem:[#allocation10 + $0xf8] sm:$0xff] }
  0xd0   :  { %622 = vperm.xlu0 %2471, %v523_v51   ;;  %637 = vperm.xlu1 %2472, %v526_v59  }
  0xd1   :  { %2415 = vmatmul.mubr.msk.bf16.gmra.mrb[8].mxu0 %vm4303_vm0, %v202_v48  ;;  %2435 = vmatmul.mubr.msk.bf16.gmra.mrb[8].mxu1 %vm4303_vm0, %v212_v49 }
  0xd2   :  { %2418 = vmatprep.mubr.msk.bf16.mxu0 %vm4303_vm0, %v203_v50  ;;  %2442 = vmatprep.mubr.msk.bf16.mxu1 %vm2959_vm1, %v2958_v21  ;;  %v537_v21 = vld [vmem:[#allocation10 + $0xf0] sm:$0xff]  ;;  %vm1143_vm1 = vcmask 1048512  }
  0xd4   :  { %632 = vperm.xlu0 %2471, %v525_v58   ;;  %647 = vperm.xlu1 %2472, %v528_v0   ;;  %v2960_v58 = vmov 1966171168  }
  0xd5   :  { %v740_v59 = vunpack.c.l.s4 %v2960_v58 }
  0xd8   :  { %642 = vperm.xlu0 %2471, %v527_v63   ;;  %652 = vperm.xlu1 %2472, %v529_v4  }
  0xd9   :  { %2419 = vmatmul.mubr.msk.bf16.gmra.mrb[12].mxu0 %vm4303_vm0, %v204_v60  ;;  %2443 = vmatmul.mubr.msk.bf16.vlgmr.msra.gmra.mrb[12].mxu1 %vm4303_vm0, %v440_v61  ;;  %v4292_v60 = vlaneseq }
  0xda   :  { %2422 = vmatprep.mubr.msk.bf16.mxu0 %vm4303_vm0, %v205_v62 }
  0xdc   :  { %572 = vperm.xlu0 %2471, %v513_v3   ;;  %657 = vperm.xlu1 %2472, %v530_v7   ;;  %v2375_v7 = vld [vmem:[#allocation14] ss:$0 sm:$0xff] }
  0xe0   :  { %577 = vperm.xlu0 %2471, %v514_v6   ;;  %662 = vperm.xlu1 %2472, %v531_v9   ;;  %v3253_v6 = vshrl.u32 %v4292_v60, 7 }
  0xe1   :  { %2423 = vmatmul.mubr.msk.bf16.gmra.mrb[16].mxu0 %vm4303_vm0, %v206_v5  ;;  %v741_v5 = vunpack.c.0.s8 %v740_v59 }
  0xe2   :  { %4343 = vst [vmem:[#allocation32_spill] sm:$0xff] %v3253_v6 }
  0xe3   :  { %v744_v9 = vsub.s32 %v741_v5, %v3253_v6 }
  0xe4   :  { %582 = vperm.xlu0 %2471, %v515_v8   ;;  %667 = vperm.xlu1 %2472, %v532_v11  }
  0xe8   :  { %587 = vperm.xlu0 %2471, %v516_v10   ;;  %672 = vperm.xlu1 %2472, %v533_v13  }
  0xec   :  { %592 = vperm.xlu0 %2471, %v517_v12   ;;  %677 = vperm.xlu1 %2472, %v534_v15  }
  0xf0   :  { %597 = vperm.xlu0 %2471, %v518_v14   ;;  %682 = vperm.xlu1 %2472, %v535_v17  }
  0xf4   :  { %602 = vperm.xlu0 %2471, %v519_v16   ;;  %687 = vperm.xlu1 %2472, %v536_v19   ;;  %v3259_v19 = vsub.s32 0, %v3253_v6 }
  0xf6   :  { %4345 = vst [vmem:[#allocation34_spill] sm:$0xff] %v3259_v19 }
  0xf8   :  { %607 = vperm.xlu0 %2471, %v520_v18   ;;  %692 = vperm.xlu1 %2472, %v537_v21  }
  0xfc   :  { %612 = vperm.xlu0 %2471, %v521_v20   ;;  %697 = vperm.xlu1 %2472, %v538_v23  }
 0x100   :  { %617 = vperm.xlu0 %2471, %v522_v22  }
 0x13e   :  { %v3178_v24 = vpop.permute.xlu1 %552 }
 0x143   :  { %v3180_v25 = vpop.permute.xlu1 %557  ;;  %v3198_v34 = vpop.permute.xlu0 %542 }
 0x147   :  { %v3182_v26 = vpop.permute.xlu1 %567  ;;  %v3202_v36 = vpop.permute.xlu0 %547 }
 0x14b   :  { %v3184_v27 = vpop.permute.xlu1 %627  ;;  %v3218_v46 = vpop.permute.xlu0 %562 }
 0x14f   :  { %v3186_v28 = vpop.permute.xlu1 %637  ;;  %v623_v56 = vpop.permute.xlu0 %622 }
 0x153   :  { %v3188_v29 = vpop.permute.xlu1 %647  ;;  %v633_v8 = vpop.permute.xlu0 %632 }
 0x157   :  { %v3190_v30 = vpop.permute.xlu1 %652  ;;  %v3261_v58 = vpop.permute.xlu0 %642 }
 0x15b   :  { %v3192_v31 = vpop.permute.xlu1 %657 }
 0x15f   :  { %v3194_v32 = vpop.permute.xlu1 %662 }
 0x163   :  { %v3196_v33 = vpop.permute.xlu1 %667 }
 0x167   :  { %v3200_v35 = vpop.permute.xlu1 %672 }
 0x16b   :  { %v3204_v37 = vpop.permute.xlu1 %677 }
 0x16f   :  { %v3220_v47 = vpop.permute.xlu1 %682 }
 0x173   :  { %v3238_v57 = vpop.permute.xlu1 %687 }
 0x174   :  { %4342 = vst [vmem:[#allocation31_spill] sm:$0xff] %v3238_v57 }
 0x177   :  { %v3256_v10 = vpop.permute.xlu1 %692 }
 0x178   :  { %4344 = vst [vmem:[#allocation33_spill] sm:$0xff] %v3256_v10 }
 0x194   :  { %v3206_v38 = vpop.f32.mrb[0].mxu1  ;;  %v3208_v39 = vpop.f32.mrb[0].mxu0 }
 0x195   :  { %v3210_v40 = vpop.f32.mrb[1].mxu1  ;;  %v312_v41 = vpop.f32.mrb[1].mxu0 }
 0x196   :  { %v3212_v42 = vpop.f32.mrb[2].mxu1  ;;  %v3214_v43 = vpop.f32.mrb[2].mxu0 }
 0x197   :  { %v3216_v44 = vpop.f32.mrb[3].mxu1  ;;  %v315_v45 = vpop.f32.mrb[3].mxu0 }
 0x19c   :  { %v3222_v48 = vpop.f32.mrb[4].mxu1  ;;  %v3224_v49 = vpop.f32.mrb[4].mxu0 }
 0x19d   :  { %v3226_v50 = vpop.f32.mrb[5].mxu1  ;;  %v3228_v51 = vpop.f32.mrb[5].mxu0 }
 0x19e   :  { %v3230_v52 = vpop.f32.mrb[6].mxu1  ;;  %v3232_v53 = vpop.f32.mrb[6].mxu0 }
 0x19f   :  { %v3234_v54 = vpop.f32.mrb[7].mxu1  ;;  %v3236_v55 = vpop.f32.mrb[7].mxu0 }
 0x1a4   :  { %v2436_v61 = vpop.f32.mrb[8].mxu1  ;;  %v3240_v62 = vpop.f32.mrb[8].mxu0 }
 0x1a5   :  { %v3242_v63 = vpop.f32.mrb[9].mxu1  ;;  %v3244_v0 = vpop.f32.mrb[9].mxu0 }
 0x1a6   :  { %v2437_v1 = vpop.f32.mrb[10].mxu1  ;;  %v3246_v2 = vpop.f32.mrb[10].mxu0 }
 0x1a7   :  { %v3248_v3 = vpop.f32.mrb[11].mxu1  ;;  %v3250_v4 = vpop.f32.mrb[11].mxu0 }
 0x1ac   :  { %v501_v11 = vpop.f32.mrb[12].mxu1  ;;  %v2420_v12 = vpop.f32.mrb[12].mxu0 }
 0x1ad   :  { %v502_v13 = vadd.f32 %v2375_v7, %v501_v11  ;;  %v2444_v14 = vpop.f32.mrb[13].mxu1  ;;  %v360_v15 = vpop.f32.mrb[13].mxu0 }
 0x1ae   :  { %v504_v16 = vpop.f32.mrb[14].mxu1  ;;  %v2421_v17 = vpop.f32.mrb[14].mxu0 }
 0x1af   :  { %v745_v18 = vrot.slane %v502_v13, %v744_v9  ;;  %v2445_v20 = vpop.f32.mrb[15].mxu1  ;;  %v363_v21 = vpop.f32.mrb[15].mxu0 }
 0x1b0   :  { %v698_v16 = vpop.permute.xlu1 %697 }
 0x1b1   :  { %v746_v22 = vcombine.high %v745_v18, %v745_v18  ;;  %v753_v23 = vrot.slane %v745_v18, %v744_v9 }
 0x1b3   :  { %v760_v59 = vrot.slane %v746_v22, %v744_v9  ;;  %v764_v5 = vrot.slane %v753_v23, %v3259_v19  ;;  %v3276_v22 = vld [vmem:[#allocation16] ss:$0 sm:$0xff] }
 0x1b4   :  { %v2424_v60 = vpop.f32.mrb[16].mxu0 }
 0x1b5   :  { %v3265_v7 = vrot.slane %v760_v59, %v3259_v19  ;;  %v3267_v11 = vadd.f32 %v2420_v12, %v764_v5  ;;  %v3269_v14 = vadd.f32 %v764_v5, %v360_v15  ;;  %v3271_v13 = vadd.f32 %v2421_v17, %v764_v5  ;;  %v376_v20 = vpop.f32.mrb[17].mxu0  ;;  %v573_v19 = vpop.permute.xlu0 %572 }
 0x1b6   :  { %v3273_v6 = vadd.f32 %v764_v5, %v363_v21  ;;  %v2425_v18 = vpop.f32.mrb[18].mxu0  ;;  %v771_v10 = vadd.f32 %v764_v5, %v312_v41  ;;  %v772_v57 = vadd.f32 %v764_v5, %v315_v45  ;;  %v773_v9 = vadd.f32 %v3208_v39, %v764_v5 }
 0x1b7   :  { %4346 = vst [vmem:[#allocation35_spill] sm:$0xff] %v3271_v13  ;;  %v3279_v23 = vadd.f32 %v2436_v61, %v3265_v7  ;;  %v379_v12 = vpop.f32.mrb[19].mxu0  ;;  %v737_v15 = vmul.f32 %v3276_v22, %v698_v16  ;;  %v802_v17 = vadd.f32 %v2437_v1, %v3265_v7  ;;  %v789_v59 = vadd.f32 %v2424_v60, %v3265_v7 }
 0x1b8   :  { %v787_v21 = vadd.f32 %v3265_v7, %v376_v20  ;;  %v790_v41 = vadd.f32 %v2425_v18, %v3265_v7  ;;  %v3287_v45 = vadd.f32 %v3265_v7, %v379_v12  ;;  %v706_v61 = vmul.f32 %v3276_v22, %v3198_v34 }
 0x1b9   :  { %4347 = vst [vmem:[#allocation36_spill] sm:$0xff] %v3279_v23  ;;  %v834_v39 = vadd.f32 %v802_v17, %v737_v15  ;;  %v722_v23 = vmul.f32 %v3276_v22, %v623_v56  ;;  %v774_v16 = vadd.f32 %v3214_v43, %v764_v5  ;;  %v708_v1 = vmul.f32 %v3276_v22, %v3178_v24  ;;  %v3304_v43 = vpop.permute.xlu0 %577 }
 0x1ba   :  { %v775_v60 = vadd.f32 %v764_v5, %v3228_v51  ;;  %v776_v20 = vadd.f32 %v764_v5, %v3236_v55  ;;  %v791_v18 = vadd.f32 %v3265_v7, %v3210_v40  ;;  %v707_v12 = vmul.f32 %v3276_v22, %v3202_v36 }
 0x1bb   :  { %v819_v15 = vadd.f32 %v787_v21, %v722_v23  ;;  %v777_v34 = vadd.f32 %v3224_v49, %v764_v5  ;;  %v792_v56 = vadd.f32 %v3265_v7, %v3216_v44  ;;  %v803_v17 = vadd.f32 %v771_v10, %v706_v61  ;;  %v3362_v23 = vld [vmem:[#allocation17] ss:$0 sm:$0xff] }
 0x1bc   :  { %v724_v24 = vmul.f32 %v3276_v22, %v633_v8  ;;  %v804_v51 = vadd.f32 %v772_v57, %v707_v12  ;;  %v805_v13 = vadd.f32 %v773_v9, %v708_v1  ;;  %v3308_v55 = vadd.f32 %v3232_v53, %v764_v5 }
 0x1bd   :  { %2477 = vtanh.f32 %v834_v39  ;;  %v793_v36 = vadd.f32 %v3206_v38, %v3265_v7  ;;  %v3313_v40 = vadd.f32 %v764_v5, %v3244_v0  ;;  %v3317_v44 = vadd.f32 %v3212_v42, %v3265_v7  ;;  %v583_v10 = vpop.permute.xlu0 %582 }
 0x1be   :  { %v709_v49 = vmul.f32 %v3276_v22, %v3180_v25  ;;  %2479 = vtanh.f32 %v819_v15  ;;  %v3322_v57 = vadd.f32 %v764_v5, %v3250_v4  ;;  %v3326_v53 = vadd.f32 %v3265_v7, %v3226_v50 }
 0x1bf   :  { %v821_v8 = vadd.f32 %v789_v59, %v724_v24  ;;  %2481 = vtanh.f32 %v803_v17  ;;  %v725_v38 = vmul.f32 %v3276_v22, %v3186_v28  ;;  %v3331_v42 = vadd.f32 %v3240_v62, %v764_v5 }
 0x1c0   :  { %2483 = vtanh.f32 %v804_v51  ;;  %v806_v0 = vadd.f32 %v774_v16, %v709_v49  ;;  %v3335_v25 = vadd.f32 %v3265_v7, %v3234_v54  ;;  %v3338_v4 = vadd.f32 %v3246_v2, %v764_v5 }
 0x1c1   :  { %2485 = vtanh.f32 %v805_v13  ;;  %v3342_v50 = vadd.f32 %v3222_v48, %v3265_v7  ;;  %v710_v28 = vmul.f32 %v3276_v22, %v3218_v46  ;;  %v3348_v62 = vadd.f32 %v3230_v52, %v3265_v7  ;;  %v588_v5 = vpop.permute.xlu0 %587 }
 0x1c2   :  { %2487 = vtanh.f32 %v821_v8  ;;  %v822_v13 = vadd.f32 %v790_v41, %v725_v38  ;;  %v726_v54 = vmul.f32 %v3276_v22, %v3261_v58  ;;  %v3354_v2 = vadd.f32 %v3265_v7, %v3242_v63 }
 0x1c3   :  { %2489 = vtanh.f32 %v806_v0  ;;  %v807_v9 = vadd.f32 %v775_v60, %v710_v28  ;;  %v711_v48 = vmul.f32 %v3276_v22, %v3182_v26  ;;  %v3360_v46 = vadd.f32 %v3265_v7, %v3248_v3 }
 0x1c4   :  { %2491 = vtanh.f32 %v822_v13  ;;  %v823_v59 = vadd.f32 %v791_v18, %v726_v54  ;;  %v727_v63 = vmul.f32 %v3276_v22, %v3188_v29  ;;  %v712_v26 = vmul.f32 %v3276_v22, %v573_v19 }
 0x1c5   :  { %2493 = vtanh.f32 %v807_v9  ;;  %v808_v58 = vadd.f32 %v776_v20, %v711_v48  ;;  %v728_v19 = vmul.f32 %v3276_v22, %v3190_v30  ;;  %v593_v12 = vpop.permute.xlu0 %592  ;;  %v713_v24 = vmul.f32 %v3276_v22, %v3304_v43 }
 0x1c6   :  { %2495 = vtanh.f32 %v823_v59  ;;  %v824_v16 = vadd.f32 %v792_v56, %v727_v63  ;;  %v809_v18 = vadd.f32 %v777_v34, %v712_v26  ;;  %v729_v38 = vmul.f32 %v3276_v22, %v3192_v31 }
 0x1c7   :  { %v2478_v52 = vpop.eup %2477  ;;  %2497 = vtanh.f32 %v808_v58  ;;  %v825_v51 = vadd.f32 %v793_v36, %v728_v19  ;;  %v810_v30 = vadd.f32 %v3308_v55, %v713_v24  ;;  %v714_v13 = vmul.f32 %v3276_v22, %v583_v10 }
 0x1c8   :  { %v2480_v21 = vpop.eup %2479  ;;  %v3370_v1 = vmul.f32 %v2478_v52, %v3362_v23  ;;  %2499 = vtanh.f32 %v824_v16  ;;  %v826_v9 = vadd.f32 %v3317_v44, %v729_v38  ;;  %v730_v52 = vmul.f32 %v3276_v22, %v3194_v32 }
 0x1c9   :  { %v2482_v41 = vpop.eup %2481  ;;  %v890_v20 = vmul.f32 %v2480_v21, %v3362_v23  ;;  %2501 = vtanh.f32 %v809_v18  ;;  %v598_v36 = vpop.permute.xlu0 %597  ;;  %v811_v31 = vadd.f32 %v3313_v40, %v714_v13  ;;  %v715_v58 = vmul.f32 %v3276_v22, %v588_v5 }
 0x1ca   :  { %v2484_v39 = vpop.eup %2483  ;;  %v874_v61 = vmul.f32 %v2482_v41, %v3362_v23  ;;  %2503 = vtanh.f32 %v825_v51  ;;  %v827_v44 = vadd.f32 %v3326_v53, %v730_v52  ;;  %v716_v53 = vmul.f32 %v3276_v22, %v593_v12 }
 0x1cb   :  { %v2486_v3 = vpop.eup %2485  ;;  %v875_v7 = vmul.f32 %v2484_v39, %v3362_v23  ;;  %v954_v49 = vsel %vm4303_vm0, %v890_v20, 0.0  ;;  %2505 = vtanh.f32 %v810_v30  ;;  %v812_v63 = vadd.f32 %v3322_v57, %v715_v58 }
 0x1cc   :  { %v906_v60 = vsel %vm4303_vm0, %v874_v61, 0.0  ;;  %v2488_v29 = vpop.eup %2487  ;;  %v876_v17 = vmul.f32 %v2486_v3, %v3362_v23  ;;  %2507 = vtanh.f32 %v826_v9  ;;  %v731_v39 = vmul.f32 %v3276_v22, %v3196_v33 }
 0x1cd   :  { %907 = vadd.xlane.f32.xlu0 %v906_v60  ;;  %v909_v15 = vsel %vm4303_vm0, %v875_v7, 0.0  ;;  %v2490_v56 = vpop.eup %2489  ;;  %v892_v34 = vmul.f32 %v2488_v29, %v3362_v23  ;;  %2509 = vtanh.f32 %v811_v31  ;;  %v603_v26 = vpop.permute.xlu0 %602  ;;  %v813_v33 = vadd.f32 %v3331_v42, %v716_v53 }
 0x1ce   :  { %910 = vadd.xlane.f32.xlu1 %v909_v15  ;;  %v2492_v8 = vpop.eup %2491  ;;  %v912_v0 = vsel %vm4303_vm0, %v876_v17, 0.0  ;;  %v877_v28 = vmul.f32 %v2490_v56, %v3362_v23  ;;  %2511 = vtanh.f32 %v827_v44  ;;  %v828_v7 = vadd.f32 %v3335_v25, %v731_v39 }
 0x1cf   :  { %v2494_v43 = vpop.eup %2493  ;;  %v960_v54 = vsel %vm4303_vm0, %v892_v34, 0.0  ;;  %v893_v55 = vmul.f32 %v2492_v8, %v3362_v23  ;;  %2513 = vtanh.f32 %v812_v63  ;;  %v732_v20 = vmul.f32 %v3276_v22, %v3200_v35 }
 0x1d0   :  { %v2496_v48 = vpop.eup %2495  ;;  %v915_v59 = vsel %vm4303_vm0, %v877_v28, 0.0  ;;  %v878_v10 = vmul.f32 %v2494_v43, %v3362_v23  ;;  %v717_v12 = vmul.f32 %v3276_v22, %v598_v36  ;;  %2515 = vtanh.f32 %v828_v7  ;;  %v4350_v7 = vld [vmem:[#allocation33_spill] sm:$0xff] }
 0x1d1   :  { %955 = vadd.xlane.f32.xlu0 %v954_v49  ;;  %v2498_v21 = vpop.eup %2497  ;;  %v963_v41 = vsel %vm4303_vm0, %v893_v55, 0.0  ;;  %v894_v40 = vmul.f32 %v2496_v48, %v3362_v23  ;;  %v608_v25 = vpop.permute.xlu0 %607  ;;  %v829_v15 = vadd.f32 %v3342_v50, %v732_v20  ;;  %2517 = vtanh.f32 %v813_v33  ;;  %v4351_v20 = vld [vmem:[#allocation36_spill] sm:$0xff] }
 0x1d2   :  { %913 = vadd.xlane.f32.xlu1 %v912_v0  ;;  %v2500_v32 = vpop.eup %2499  ;;  %v918_v61 = vsel %vm4303_vm0, %v878_v10, 0.0  ;;  %v879_v5 = vmul.f32 %v2498_v21, %v3362_v23  ;;  %v814_v35 = vadd.f32 %v3338_v4, %v717_v12  ;;  %v733_v24 = vmul.f32 %v3276_v22, %v3204_v37 }
 0x1d3   :  { %v2502_v3 = vpop.eup %2501  ;;  %v966_v16 = vsel %vm4303_vm0, %v894_v40, 0.0  ;;  %v895_v57 = vmul.f32 %v2500_v32, %v3362_v23  ;;  %v718_v30 = vmul.f32 %v3276_v22, %v603_v26  ;;  %2519 = vtanh.f32 %v829_v15 }
 0x1d4   :  { %v2504_v60 = vpop.eup %2503  ;;  %v921_v18 = vsel %vm4303_vm0, %v879_v5, 0.0  ;;  %v880_v29 = vmul.f32 %v2502_v3, %v3362_v23  ;;  %v830_v50 = vadd.f32 %v3348_v62, %v733_v24  ;;  %2521 = vtanh.f32 %v814_v35 }
 0x1d5   :  { %961 = vadd.xlane.f32.xlu0 %v960_v54  ;;  %v2506_v19 = vpop.eup %2505  ;;  %v969_v17 = vsel %vm4303_vm0, %v895_v57, 0.0  ;;  %v896_v42 = vmul.f32 %v2504_v60, %v3362_v23  ;;  %v815_v8 = vadd.f32 %v3269_v14, %v718_v30  ;;  %v723_v0 = vmul.f32 %v3276_v22, %v3184_v27  ;;  %v613_v28 = vpop.permute.xlu0 %612 }
 0x1d6   :  { %916 = vadd.xlane.f32.xlu1 %v915_v59  ;;  %v2508_v56 = vpop.eup %2507  ;;  %v924_v51 = vsel %vm4303_vm0, %v880_v29, 0.0  ;;  %v881_v49 = vmul.f32 %v2506_v19, %v3362_v23  ;;  %v719_v62 = vmul.f32 %v3276_v22, %v608_v25  ;;  %2523 = vtanh.f32 %v830_v50 }
 0x1d7   :  { %v2510_v34 = vpop.eup %2509  ;;  %v972_v4 = vsel %vm4303_vm0, %v896_v42, 0.0  ;;  %v897_v38 = vmul.f32 %v2508_v56, %v3362_v23  ;;  %v820_v14 = vadd.f32 %v3287_v45, %v723_v0  ;;  %2525 = vtanh.f32 %v815_v8 }
 0x1d8   :  { %v2512_v37 = vpop.eup %2511  ;;  %v927_v43 = vsel %vm4303_vm0, %v881_v49, 0.0  ;;  %v882_v13 = vmul.f32 %v2510_v34, %v3362_v23  ;;  %v816_v9 = vadd.f32 %v3273_v6, %v719_v62  ;;  %v734_v31 = vmul.f32 %v3276_v22, %v3220_v47 }
 0x1d9   :  { %964 = vadd.xlane.f32.xlu0 %v963_v41  ;;  %v2514_v36 = vpop.eup %2513  ;;  %v975_v54 = vsel %vm4303_vm0, %v897_v38, 0.0  ;;  %v898_v27 = vmul.f32 %v2512_v37, %v3362_v23  ;;  %v720_v45 = vmul.f32 %v3276_v22, %v613_v28  ;;  %v618_v10 = vpop.permute.xlu0 %617  ;;  %2527 = vtanh.f32 %v820_v14  ;;  %v4348_v41 = vld [vmem:[#allocation31_spill] sm:$0xff] }
 0x1da   :  { %919 = vadd.xlane.f32.xlu1 %v918_v61  ;;  %v2516_v55 = vpop.eup %2515  ;;  %v930_v48 = vsel %vm4303_vm0, %v882_v13, 0.0  ;;  %v883_v52 = vmul.f32 %v2514_v36, %v3362_v23  ;;  %v831_v6 = vadd.f32 %v3354_v2, %v734_v31  ;;  %2529 = vtanh.f32 %v816_v9  ;;  %v4349_v2 = vld [vmem:[#allocation35_spill] sm:$0xff]  ;;  %v1338_v9 = vld [vmem:[#allocation7] sm:$0x3] }
 0x1db   :  { %v2518_v59 = vpop.eup %2517  ;;  %v817_v21 = vadd.f32 %v3267_v11, %v720_v45  ;;  %v978_v58 = vsel %vm4303_vm0, %v898_v27, 0.0  ;;  %v899_v47 = vmul.f32 %v2516_v55, %v3362_v23  ;;  %v735_v40 = vmul.f32 %v3276_v22, %v4348_v41  ;;  %v4353_v55 = vld [vmem:[#allocation32_spill] sm:$0xff] }
 0x1dc   :  { %v933_v63 = vsel %vm4303_vm0, %v883_v52, 0.0  ;;  %v884_v32 = vmul.f32 %v2518_v59, %v3362_v23  ;;  %v721_v26 = vmul.f32 %v3276_v22, %v618_v10  ;;  %2531 = vtanh.f32 %v831_v6 }
 0x1dd   :  { %967 = vadd.xlane.f32.xlu0 %v966_v16  ;;  %v2520_v44 = vpop.eup %2519  ;;  %v832_v11 = vadd.f32 %v3360_v46, %v735_v40  ;;  %2533 = vtanh.f32 %v817_v21  ;;  %v981_v5 = vsel %vm4303_vm0, %v899_v47, 0.0  ;;  %v736_v16 = vmul.f32 %v3276_v22, %v4350_v7 }
 0x1de   :  { %922 = vadd.xlane.f32.xlu1 %v921_v18  ;;  %v2522_v39 = vpop.eup %2521  ;;  %v818_v61 = vadd.f32 %v4349_v2, %v721_v26  ;;  %v900_v3 = vmul.f32 %v2520_v44, %v3362_v23  ;;  %v936_v57 = vsel %vm4303_vm0, %v884_v32, 0.0  ;;  %v999_v14 = vsel %vm4303_vm0, %v3370_v1, 0.0 }
 0x1df   :  { %v885_v33 = vmul.f32 %v2522_v39, %v3362_v23  ;;  %v833_v46 = vadd.f32 %v4351_v20, %v736_v16  ;;  %2535 = vtanh.f32 %v832_v11  ;;  %v3487_v31 = vsub.s32 1, %v4353_v55 }
 0x1e0   :  { %v2524_v53 = vpop.eup %2523  ;;  %2537 = vtanh.f32 %v818_v61  ;;  %v984_v18 = vsel %vm4303_vm0, %v900_v3, 0.0  ;;  %v4355_v2 = vlaneseq }
 0x1e1   :  { %970 = vadd.xlane.f32.xlu0 %v969_v17  ;;  %v2526_v60 = vpop.eup %2525  ;;  %v901_v29 = vmul.f32 %v2524_v53, %v3362_v23  ;;  %v939_v12 = vsel %vm4303_vm0, %v885_v33, 0.0  ;;  %2539 = vtanh.f32 %v833_v46  ;;  %4354 = vst [vmem:[#allocation31_spill] sm:$0xff] %v3487_v31 }
 0x1e2   :  { %925 = vadd.xlane.f32.xlu1 %v924_v51  ;;  %v886_v22 = vmul.f32 %v2526_v60, %v3362_v23  ;;  %v1035_v61 = vand.u32 127, %v4355_v2 }
 0x1e3   :  { %v2528_v19 = vpop.eup %2527  ;;  %v987_v15 = vsel %vm4303_vm0, %v901_v29, 0.0 }
 0x1e4   :  { %v2530_v25 = vpop.eup %2529  ;;  %v891_v17 = vmul.f32 %v2528_v19, %v3362_v23  ;;  %v942_v35 = vsel %vm4303_vm0, %v886_v22, 0.0  ;;  %v1040_v53 = vadd.s32 4294967288, %v1035_v61  ;;  %v1047_v7 = vadd.s32 4294967280, %v1035_v61 }
 0x1e5   :  { %973 = vadd.xlane.f32.xlu0 %v972_v4  ;;  %v887_v56 = vmul.f32 %v2530_v25, %v3362_v23  ;;  %v1061_v33 = vadd.s32 4294967264, %v1035_v61  ;;  %v3548_v20 = vsub.s32 %v1035_v61, %v4353_v55  ;;  %v1075_v29 = vadd.s32 4294967248, %v1035_v61 }
 0x1e6   :  { %928 = vadd.xlane.f32.xlu1 %v927_v43  ;;  %v2532_v42 = vpop.eup %2531  ;;  %v957_v51 = vsel %vm4303_vm0, %v891_v17, 0.0  ;;  %v3551_v46 = vsub.s32 %v1040_v53, %v4353_v55  ;;  %v1082_v19 = vadd.s32 4294967240, %v1035_v61  ;;  %v3554_v22 = vsub.s32 %v1047_v7, %v4353_v55 }
 0x1e7   :  { %v2534_v24 = vpop.eup %2533  ;;  %v902_v49 = vmul.f32 %v2532_v42, %v3362_v23  ;;  %v945_v30 = vsel %vm4303_vm0, %v887_v56, 0.0  ;;  %v1096_v25 = vadd.s32 4294967224, %v1035_v61  ;;  %v1110_v17 = vadd.s32 4294967208, %v1035_v61 }
 0x1e8   :  { %v888_v50 = vmul.f32 %v2534_v24, %v3362_v23  ;;  %4356 = vst [vmem:[#allocation35_spill] sm:$0xff] %v3554_v22  ;;  %v3562_v56 = vsub.s32 %v1061_v33, %v4353_v55 }
 0x1e9   :  { %976 = vadd.xlane.f32.xlu0 %v975_v54  ;;  %v2536_v34 = vpop.eup %2535  ;;  %v990_v4 = vsel %vm4303_vm0, %v902_v49, 0.0  ;;  %v4352_v54 = vld [vmem:[#allocation34_spill] sm:$0xff]  ;;  %v1117_v49 = vadd.s32 4294967200, %v1035_v61 }
 0x1ea   :  { %931 = vadd.xlane.f32.xlu1 %v930_v48  ;;  %v2538_v8 = vpop.eup %2537  ;;  %v903_v38 = vmul.f32 %v2536_v34, %v3362_v23  ;;  %v948_v0 = vsel %vm4303_vm0, %v888_v50, 0.0  ;;  %v3483_v27 = vrot.slane %v1338_v9, %v4352_v54  ;;  %4358 = vst [vmem:[#allocation36_spill] sm:$0xff] %v3562_v56  ;;  %v1124_v34 = vadd.s32 4294967192, %v1035_v61 }
 0x1eb   :  { %v2540_v37 = vpop.eup %2539  ;;  %v889_v28 = vmul.f32 %v2538_v8, %v3362_v23  ;;  %v3573_v50 = vsub.s32 %v1082_v19, %v4353_v55 }
 0x1ec   :  { %v993_v43 = vsel %vm4303_vm0, %v903_v38, 0.0  ;;  %v904_v13 = vmul.f32 %v2540_v37, %v3362_v23  ;;  %v1410_v23 = vrot.slane %v1338_v9, %v3487_v31  ;;  %v3579_v38 = vsub.s32 %v1096_v25, %v4353_v55 }
 0x1ed   :  { %979 = vadd.xlane.f32.xlu0 %v978_v58  ;;  %v951_v36 = vsel %vm4303_vm0, %v889_v28, 0.0  ;;  %4361 = vst [vmem:[#allocation38_spill] sm:$0xff] %v3573_v50  ;;  %v3607_v53 = vsub.s32 %v1124_v34, %v4353_v55 }
 0x1ee   :  { %934 = vadd.xlane.f32.xlu1 %v933_v63  ;;  %v996_v62 = vsel %vm4303_vm0, %v904_v13, 0.0  ;;  %4363 = vst [vmem:[#allocation40_spill] sm:$0xff] %v3579_v38  ;;  %vm4341_vm0 = vcmask 1041409  }
 0x1ef   :  { %4367 = vst [vmem:[#allocation44_spill] sm:$0xff] %v3607_v53 }
 0x1f1   :  { %982 = vadd.xlane.f32.xlu0 %v981_v5 }
 0x1f2   :  { %937 = vadd.xlane.f32.xlu1 %v936_v57  ;;  %v1054_v57 = vadd.s32 4294967272, %v1035_v61 }
 0x1f5   :  { %985 = vadd.xlane.f32.xlu0 %v984_v18  ;;  %v1068_v18 = vadd.s32 4294967256, %v1035_v61 }
 0x1f6   :  { %940 = vadd.xlane.f32.xlu1 %v939_v12  ;;  %v1089_v12 = vadd.s32 4294967232, %v1035_v61 }
 0x1f8   :  { %v3576_v8 = vsub.s32 %v1089_v12, %v4353_v55 }
 0x1f9   :  { %988 = vadd.xlane.f32.xlu0 %v987_v15  ;;  %v1103_v15 = vadd.s32 4294967216, %v1035_v61 }
 0x1fa   :  { %943 = vadd.xlane.f32.xlu1 %v942_v35  ;;  %v3559_v35 = vsub.s32 %v1054_v57, %v4353_v55  ;;  %4362 = vst [vmem:[#allocation39_spill] sm:$0xff] %v3576_v8 }
 0x1fb   :  { %v3582_v37 = vsub.s32 %v1103_v15, %v4353_v55 }
 0x1fc   :  { %4357 = vst [vmem:[#allocation33_spill] sm:$0xff] %v3559_v35 }
 0x1fd   :  { %958 = vadd.xlane.f32.xlu0 %v957_v51  ;;  %v3567_v51 = vsub.s32 %v1068_v18, %v4353_v55  ;;  %4364 = vst [vmem:[#allocation41_spill] sm:$0xff] %v3582_v37 }
 0x1fe   :  { %946 = vadd.xlane.f32.xlu1 %v945_v30  ;;  %v3570_v30 = vsub.s32 %v1075_v29, %v4353_v55 }
 0x1ff   :  { %4359 = vst [vmem:[#allocation32_spill] sm:$0xff] %v3567_v51 }
 0x200   :  { %4360 = vst [vmem:[#allocation37_spill] sm:$0xff] %v3570_v30 }
 0x201   :  { %991 = vadd.xlane.f32.xlu0 %v990_v4  ;;  %v1131_v4 = vadd.s32 4294967184, %v1035_v61 }
 0x202   :  { %949 = vadd.xlane.f32.xlu1 %v948_v0  ;;  %v3585_v0 = vsub.s32 %v1110_v17, %v4353_v55 }
 0x203   :  { %v3615_v18 = vsub.s32 %v1131_v4, %v4353_v55 }
 0x204   :  { %4365 = vst [vmem:[#allocation42_spill] sm:$0xff] %v3585_v0 }
 0x205   :  { %994 = vadd.xlane.f32.xlu0 %v993_v43  ;;  %v1138_v43 = vadd.s32 4294967176, %v1035_v61  ;;  %v3604_v61 = vsub.s32 %v1117_v49, %v4353_v55  ;;  %4368 = vst [vmem:[#allocation45_spill] sm:$0xff] %v3615_v18 }
 0x206   :  { %952 = vadd.xlane.f32.xlu1 %v951_v36 }
 0x207   :  { %4366 = vst [vmem:[#allocation43_spill] sm:$0xff] %v3604_v61  ;;  %v3625_v15 = vsub.s32 %v1138_v43, %v4353_v55 }
 0x209   :  { %997 = vadd.xlane.f32.xlu0 %v996_v62  ;;  %4369 = vst [vmem:[#allocation46_spill] sm:$0xff] %v3625_v15 }
 0x20d   :  { %1000 = vadd.xlane.f32.xlu0 %v999_v14 }
 0x217   :  { %1349 = vbcast.lane.b32.xlu1 %v3483_v27, 264 }
 0x21b   :  { %1353 = vbcast.lane.b32.xlu1 %v3483_v27, 272 }
 0x21f   :  { %1361 = vbcast.lane.b32.xlu1 %v3483_v27, 288 }
 0x223   :  { %1412 = vbcast.lane.b32.xlu1 %v1410_v23, 256  ;;  %1345 = vbcast.lane.b32.xlu0 %v3483_v27, 256 }
 0x227   :  { %1420 = vbcast.lane.b32.xlu1 %v1410_v23, 272  ;;  %1357 = vbcast.lane.b32.xlu0 %v3483_v27, 280 }
 0x22b   :  { %1428 = vbcast.lane.b32.xlu1 %v1410_v23, 288  ;;  %1365 = vbcast.lane.b32.xlu0 %v3483_v27, 296 }
 0x22f   :  { %1369 = vbcast.lane.b32.xlu1 %v3483_v27, 304  ;;  %1416 = vbcast.lane.b32.xlu0 %v1410_v23, 264 }
 0x233   :  { %1373 = vbcast.lane.b32.xlu1 %v3483_v27, 312  ;;  %1424 = vbcast.lane.b32.xlu0 %v1410_v23, 280 }
 0x237   :  { %1377 = vbcast.lane.b32.xlu1 %v3483_v27, 320  ;;  %1432 = vbcast.lane.b32.xlu0 %v1410_v23, 296 }
 0x23b   :  { %1381 = vbcast.lane.b32.xlu1 %v3483_v27, 328  ;;  %1436 = vbcast.lane.b32.xlu0 %v1410_v23, 304 }
 0x23f   :  { %1385 = vbcast.lane.b32.xlu1 %v3483_v27, 336  ;;  %1440 = vbcast.lane.b32.xlu0 %v1410_v23, 312 }
 0x243   :  { %1389 = vbcast.lane.b32.xlu1 %v3483_v27, 344  ;;  %1444 = vbcast.lane.b32.xlu0 %v1410_v23, 320 }
 0x247   :  { %1393 = vbcast.lane.b32.xlu1 %v3483_v27, 352  ;;  %1448 = vbcast.lane.b32.xlu0 %v1410_v23, 328 }
 0x24b   :  { %1452 = vbcast.lane.b32.xlu0 %v1410_v23, 336 }
 0x24f   :  { %1456 = vbcast.lane.b32.xlu0 %v1410_v23, 344 }
 0x253   :  { %1460 = vbcast.lane.b32.xlu0 %v1410_v23, 352 }
 0x257   :  { %1464 = vbcast.lane.b32.xlu0 %v1410_v23, 360 }
 0x25a   :  { %v3502_v1 = vpop.xlane.xlu0 %907 }
 0x25b   :  { %v3504_v48 = vpop.xlane.xlu1 %910  ;;  %1468 = vbcast.lane.b32.xlu0 %v1410_v23, 368  ;;  %v1039_v13 = vrot.slane %v3502_v1, %v3548_v20 }
 0x25c   :  { %v1044_v36 = vrot.slane %v3504_v48, %v3551_v46 }
 0x25e   :  { %v3506_v52 = vpop.xlane.xlu0 %955  ;;  %v1046_v17 = vsel %vm1045_vm2, %v1044_v36, %v1039_v13 }
 0x25f   :  { %v3508_v59 = vpop.xlane.xlu1 %913  ;;  %1472 = vbcast.lane.b32.xlu0 %v1410_v23, 376  ;;  %v1148_v62 = vrot.slane %v3506_v52, %v3548_v20 }
 0x260   :  { %v1051_v23 = vrot.slane %v3508_v59, %v3554_v22 }
 0x262   :  { %v3510_v45 = vpop.xlane.xlu0 %961 }
 0x263   :  { %v3512_v10 = vpop.xlane.xlu1 %916  ;;  %v1157_v2 = vrot.slane %v3510_v45, %v3554_v22 }
 0x264   :  { %v1058_v7 = vrot.slane %v3512_v10, %v3559_v35 }
 0x266   :  { %v3514_v6 = vpop.xlane.xlu0 %964 }
 0x267   :  { %v3516_v21 = vpop.xlane.xlu1 %919  ;;  %v1162_v57 = vrot.slane %v3514_v6, %v3559_v35 }
 0x268   :  { %v1065_v29 = vrot.slane %v3516_v21, %v3562_v56 }
 0x26a   :  { %v3518_v58 = vpop.xlane.xlu0 %967 }
 0x26b   :  { %v3520_v47 = vpop.xlane.xlu1 %922  ;;  %v1167_v19 = vrot.slane %v3518_v58, %v3562_v56 }
 0x26c   :  { %v1072_v49 = vrot.slane %v3520_v47, %v3567_v51 }
 0x26e   :  { %v3522_v44 = vpop.xlane.xlu0 %970 }
 0x26f   :  { %v3524_v41 = vpop.xlane.xlu1 %925  ;;  %v1172_v34 = vrot.slane %v3522_v44, %v3567_v51 }
 0x272   :  { %v3526_v40 = vpop.xlane.xlu0 %973 }
 0x273   :  { %v3528_v63 = vpop.xlane.xlu1 %928  ;;  %v1177_v55 = vrot.slane %v3526_v40, %v3570_v30 }
 0x276   :  { %v3530_v32 = vpop.xlane.xlu0 %976 }
 0x277   :  { %v3532_v39 = vpop.xlane.xlu1 %931 }
 0x27a   :  { %v3534_v26 = vpop.xlane.xlu0 %979 }
 0x27b   :  { %v3536_v11 = vpop.xlane.xlu1 %934 }
 0x27e   :  { %v3539_v5 = vpop.xlane.xlu0 %982 }
 0x27f   :  { %v3541_v3 = vpop.xlane.xlu1 %937 }
 0x282   :  { %v3543_v16 = vpop.xlane.xlu0 %985 }
 0x283   :  { %v3545_v60 = vpop.xlane.xlu1 %940 }
 0x286   :  { %v3556_v42 = vpop.xlane.xlu0 %988 }
 0x287   :  { %v3564_v24 = vpop.xlane.xlu1 %943 }
 0x28a   :  { %v3587_v28 = vpop.xlane.xlu0 %958 }
 0x28b   :  { %v3595_v14 = vpop.xlane.xlu1 %946  ;;  %v1152_v9 = vrot.slane %v3587_v28, %v3551_v46 }
 0x28d   :  { %v1153_v33 = vsel %vm1045_vm2, %v1152_v9, %v1148_v62  ;;  %v1053_v62 = vsel %vm1052_vm3, %v1051_v23, %v1046_v17  ;;  %v1079_v9 = vrot.slane %v3524_v41, %v3570_v30 }
 0x28e   :  { %v1158_v12 = vsel %vm1052_vm3, %v1157_v2, %v1153_v33  ;;  %v3622_v25 = vpop.xlane.xlu0 %991  ;;  %v1060_v36 = vsel %vm1059_vm4, %v1058_v7, %v1053_v62  ;;  %v1086_v2 = vrot.slane %v3528_v63, %v3573_v50  ;;  %v1100_v62 = vrot.slane %v3536_v11, %v3579_v38 }
 0x28f   :  { %v1163_v4 = vsel %vm1059_vm4, %v1162_v57, %v1158_v12  ;;  %v3639_v13 = vpop.xlane.xlu1 %949  ;;  %v1182_v57 = vrot.slane %v3530_v32, %v3573_v50  ;;  %v1067_v33 = vsel %vm1066_vm5, %v1065_v29, %v1060_v36  ;;  %v1093_v12 = vrot.slane %v3532_v39, %v3576_v8 }
 0x290   :  { %v1168_v43 = vsel %vm1066_vm5, %v1167_v19, %v1163_v4  ;;  %v1187_v19 = vrot.slane %v3534_v26, %v3576_v8  ;;  %v1074_v7 = vsel %vm1073_vm6, %v1072_v49, %v1067_v33  ;;  %v1107_v36 = vrot.slane %v3541_v3, %v3582_v37 }
 0x291   :  { %v1173_v23 = vsel %vm1073_vm6, %v1172_v34, %v1168_v43  ;;  %v1192_v34 = vrot.slane %v3539_v5, %v3579_v38  ;;  %v1081_v43 = vsel %vm1080_vm7, %v1079_v9, %v1074_v7  ;;  %v1114_v33 = vrot.slane %v3545_v60, %v3585_v0 }
 0x292   :  { %v1178_v17 = vsel %vm1080_vm7, %v1177_v55, %v1173_v23  ;;  %v3653_v4 = vpop.xlane.xlu0 %994  ;;  %v1197_v55 = vrot.slane %v3543_v16, %v3582_v37  ;;  %v1088_v49 = vsel %vm4339_vm8, %v1086_v2, %v1081_v43  ;;  %v1202_v38 = vrot.slane %v3556_v42, %v3585_v0 }
 0x293   :  { %v1183_v29 = vsel %vm4339_vm8, %v1182_v57, %v1178_v17  ;;  %v1095_v9 = vsel %vm4340_vm9, %v1093_v12, %v1088_v49  ;;  %v1121_v17 = vrot.slane %v3564_v24, %v3604_v61  ;;  %v1128_v0 = vrot.slane %v3595_v14, %v3607_v53 }
 0x294   :  { %v1188_v23 = vsel %vm4340_vm9, %v1187_v19, %v1183_v29  ;;  %v1207_v19 = vrot.slane %v3622_v25, %v3604_v61  ;;  %v3679_v29 = vpop.xlane.xlu1 %952  ;;  %v1102_v43 = vsel %vm1101_vm10, %v1100_v62, %v1095_v9  ;;  %v1212_v12 = vrot.slane %v3653_v4, %v3607_v53 }
 0x295   :  { %v1193_v57 = vsel %vm1101_vm10, %v1192_v34, %v1188_v23  ;;  %v1109_v23 = vsel %vm1108_vm11, %v1107_v36, %v1102_v43  ;;  %v1142_v9 = vrot.slane %v3679_v29, %v3625_v15 }
 0x296   :  { %v1198_v7 = vsel %vm1108_vm11, %v1197_v55, %v1193_v57  ;;  %v3681_v2 = vpop.xlane.xlu0 %997  ;;  %v1135_v55 = vrot.slane %v3639_v13, %v3615_v18  ;;  %v1116_v62 = vsel %vm4304_vm12, %v1114_v33, %v1109_v23 }
 0x297   :  { %v1203_v34 = vsel %vm4304_vm12, %v1202_v38, %v1198_v7  ;;  %v1217_v57 = vrot.slane %v3681_v2, %v3615_v18  ;;  %v1123_v7 = vsel %vm1122_vm13, %v1121_v17, %v1116_v62  ;;  %vm1227_vm12 = vcmask 1041408  }
 0x298   :  { %v1208_v49 = vsel %vm1122_vm13, %v1207_v19, %v1203_v34  ;;  %v1130_v36 = vsel %vm1129_vm14, %v1128_v0, %v1123_v7  ;;  %v1350_v0 = vpop.permute.xlu1 %1349 }
 0x299   :  { %v1213_v38 = vsel %vm1129_vm14, %v1212_v12, %v1208_v49  ;;  %v1137_v43 = vsel %vm1136_vm15, %v1135_v55, %v1130_v36 }
 0x29a   :  { %v3700_v53 = vpop.xlane.xlu0 %1000  ;;  %v1218_v33 = vsel %vm1136_vm15, %v1217_v57, %v1213_v38  ;;  %v1144_v34 = vsel %vm1143_vm1, %v1142_v9, %v1137_v43 }
 0x29b   :  { %v1222_v19 = vrot.slane %v3700_v53, %v3625_v15 }
 0x29c   :  { %v3714_v55 = vpop.permute.xlu1 %1353 }
 0x29d   :  { %v1223_v12 = vsel %vm1143_vm1, %v1222_v19, %v1218_v33 }
 0x29e   :  { %v1225_v17 = vsel %vm4341_vm0, %v1223_v12, %v1144_v34  ;;  %v1346_v33 = vpop.permute.xlu0 %1345 }
 0x29f   :  { %v1228_v23 = vsel %vm1227_vm12, %v1225_v17, -inf }
 0x2a0   :  { %1229 = vmax.xlane.f32.xlu1 %v1228_v23  ;;  %v3716_v49 = vpop.permute.xlu1 %1361 }
 0x2a2   :  { %v3738_v12 = vpop.permute.xlu0 %1357 }
 0x2a4   :  { %v3718_v57 = vpop.permute.xlu1 %1412 }
 0x2a6   :  { %v3743_v15 = vpop.permute.xlu0 %1365 }
 0x2a8   :  { %v3720_v62 = vpop.permute.xlu1 %1420 }
 0x2aa   :  { %v1417_v30 = vpop.permute.xlu0 %1416 }
 0x2ac   :  { %v3722_v9 = vpop.permute.xlu1 %1428 }
 0x2b0   :  { %v3724_v38 = vpop.permute.xlu1 %1369 }
 0x2b1   :  { %1397 = vbcast.lane.b32.xlu1 %v3483_v27, 360 }
 0x2b4   :  { %v3726_v7 = vpop.permute.xlu1 %1373 }
 0x2b5   :  { %1401 = vbcast.lane.b32.xlu1 %v3483_v27, 368 }
 0x2b8   :  { %v3728_v36 = vpop.permute.xlu1 %1377 }
 0x2b9   :  { %1405 = vbcast.lane.b32.xlu1 %v3483_v27, 376 }
 0x2bc   :  { %v3730_v19 = vpop.permute.xlu1 %1381 }
 0x2c0   :  { %v3732_v27 = vpop.permute.xlu1 %1385 }
 0x2c4   :  { %v3734_v43 = vpop.permute.xlu1 %1389 }
 0x2c8   :  { %v3736_v34 = vpop.permute.xlu1 %1393 }
 0x32d   :  { %v1230_v17 = vpop.xlane.xlu1 %1229 }
 0x32e   :  { %v3741_v23 = vrot.slane %v1230_v17, %v4352_v54  ;;  %v3746_v18 = vrot.slane %v1230_v17, %v3487_v31 }
 0x330   :  { %v1243_v61 = vsub.f32 %v3504_v48, %v3741_v23  ;;  %v1242_v37 = vsub.f32 %v3502_v1, %v3741_v23  ;;  %v1258_v8 = vsub.f32 %v3506_v52, %v3746_v18  ;;  %v1259_v50 = vsub.f32 %v3587_v28, %v3746_v18  ;;  %v1425_v1 = vpop.permute.xlu0 %1424 }
 0x331   :  { %v1260_v17 = vsub.f32 %v3510_v45, %v3746_v18  ;;  %v1244_v48 = vsub.f32 %v3508_v59, %v3741_v23  ;;  %v1261_v52 = vsub.f32 %v3514_v6, %v3746_v18  ;;  %v1262_v45 = vsub.f32 %v3518_v58, %v3746_v18 }
 0x332   :  { %v1276_v54 = vmul.f32 1.442695, %v1243_v61  ;;  %v1274_v51 = vmul.f32 1.442695, %v1242_v37  ;;  %v1306_v56 = vmul.f32 1.442695, %v1258_v8  ;;  %v1245_v8 = vsub.f32 %v3512_v10, %v3741_v23 }
 0x333   :  { %v1308_v31 = vmul.f32 1.442695, %v1259_v50  ;;  %v1310_v35 = vmul.f32 1.442695, %v1260_v17  ;;  %v1278_v28 = vmul.f32 1.442695, %v1244_v48  ;;  %v1247_v58 = vsub.f32 %v3520_v47, %v3741_v23 }
 0x334   :  { %2541 = vpow2.f32 %v1276_v54  ;;  %v1312_v37 = vmul.f32 1.442695, %v1261_v52  ;;  %v1280_v59 = vmul.f32 1.442695, %v1245_v8  ;;  %v1246_v54 = vsub.f32 %v3516_v21, %v3741_v23 }
 0x335   :  { %2543 = vpow2.f32 %v1274_v51  ;;  %v1314_v6 = vmul.f32 1.442695, %v1262_v45  ;;  %v1248_v47 = vsub.f32 %v3524_v41, %v3741_v23  ;;  %v1249_v41 = vsub.f32 %v3528_v63, %v3741_v23 }
 0x336   :  { %2545 = vpow2.f32 %v1306_v56  ;;  %v3768_v56 = vpop.permute.xlu0 %1432  ;;  %v1250_v63 = vsub.f32 %v3532_v39, %v3741_v23 }
 0x337   :  { %2547 = vpow2.f32 %v1308_v31  ;;  %v1263_v31 = vsub.f32 %v3522_v44, %v3746_v18 }
 0x338   :  { %2549 = vpow2.f32 %v1310_v35  ;;  %v1282_v35 = vmul.f32 1.442695, %v1246_v54  ;;  %v1290_v39 = vmul.f32 1.442695, %v1250_v63 }
 0x339   :  { %2551 = vpow2.f32 %v1278_v28  ;;  %v1316_v44 = vmul.f32 1.442695, %v1263_v31  ;;  %v1284_v28 = vmul.f32 1.442695, %v1247_v58 }
 0x33a   :  { %2553 = vpow2.f32 %v1312_v37  ;;  %v3779_v48 = vpop.permute.xlu0 %1436 }
 0x33b   :  { %2555 = vpow2.f32 %v1280_v59  ;;  %v1286_v59 = vmul.f32 1.442695, %v1248_v47 }
 0x33c   :  { %2557 = vpow2.f32 %v1314_v6 }
 0x33d   :  { %2559 = vpow2.f32 %v1282_v35 }
 0x33e   :  { %v2542_v51 = vpop.eup %2541  ;;  %2561 = vpow2.f32 %v1316_v44  ;;  %v1441_v54 = vpop.permute.xlu0 %1440 }
 0x33f   :  { %v2544_v50 = vpop.eup %2543  ;;  %v3772_v10 = vmul.f32 %v2542_v51, %v1350_v0  ;;  %v1264_v0 = vsub.f32 %v3526_v40, %v3746_v18  ;;  %v1265_v40 = vsub.f32 %v3530_v32, %v3746_v18  ;;  %2563 = vpow2.f32 %v1284_v28 }
 0x340   :  { %v2546_v61 = vpop.eup %2545  ;;  %v3776_v17 = vmul.f32 %v2544_v50, %v1346_v33  ;;  %v1288_v50 = vmul.f32 1.442695, %v1249_v41  ;;  %v1253_v41 = vsub.f32 %v3545_v60, %v3741_v23  ;;  %v1254_v60 = vsub.f32 %v3564_v24, %v3741_v23 }
 0x341   :  { %v2548_v21 = vpop.eup %2547  ;;  %1574 = vperm.xlu0 %2471, %v3772_v10   ;;  %v3789_v8 = vmul.f32 %v2546_v61, %v3718_v57  ;;  %v1318_v45 = vmul.f32 1.442695, %v1264_v0  ;;  %v1320_v32 = vmul.f32 1.442695, %v1265_v40 }
 0x342   :  { %1571 = vperm.xlu1 %2472, %v3776_v17   ;;  %v3784_v52 = vmul.f32 %v2548_v21, %v1417_v30  ;;  %v2550_v33 = vpop.eup %2549  ;;  %v1445_v61 = vpop.permute.xlu0 %1444  ;;  %v1298_v24 = vmul.f32 1.442695, %v1254_v60 }
 0x343   :  { %v2552_v37 = vpop.eup %2551  ;;  %v3796_v30 = vmul.f32 %v2550_v33, %v3720_v62  ;;  %2565 = vpow2.f32 %v1318_v45  ;;  %v1266_v62 = vsub.f32 %v3534_v26, %v3746_v18  ;;  %v1267_v26 = vsub.f32 %v3539_v5, %v3746_v18 }
 0x344   :  { %v2554_v57 = vpop.eup %2553  ;;  %v3801_v51 = vmul.f32 %v2552_v37, %v3714_v55  ;;  %2567 = vpow2.f32 %v1286_v59  ;;  %v1268_v5 = vsub.f32 %v3543_v16, %v3746_v18  ;;  %v1269_v59 = vsub.f32 %v3556_v42, %v3746_v18 }
 0x345   :  { %1622 = vperm.xlu0 %2471, %v3784_v52   ;;  %v2556_v6 = vpop.eup %2555  ;;  %v3807_v31 = vmul.f32 %v2554_v57, %v1425_v1  ;;  %2569 = vpow2.f32 %v1320_v32  ;;  %v1322_v21 = vmul.f32 1.442695, %v1266_v62  ;;  %v1324_v47 = vmul.f32 1.442695, %v1267_v26 }
 0x346   :  { %1619 = vperm.xlu1 %2472, %v3789_v8   ;;  %v2558_v35 = vpop.eup %2557  ;;  %v3812_v55 = vmul.f32 %v2556_v6, %v3738_v12  ;;  %2571 = vpow2.f32 %v1288_v50  ;;  %v1251_v12 = vsub.f32 %v3536_v11, %v3741_v23  ;;  %v1252_v11 = vsub.f32 %v3541_v3, %v3741_v23  ;;  %v1449_v37 = vpop.permute.xlu0 %1448 }
 0x347   :  { %v2560_v58 = vpop.eup %2559  ;;  %v3819_v1 = vmul.f32 %v2558_v35, %v3722_v9  ;;  %2573 = vpow2.f32 %v1322_v21  ;;  %v1326_v16 = vmul.f32 1.442695, %v1268_v5  ;;  %v1328_v32 = vmul.f32 1.442695, %v1269_v59 }
 0x348   :  { %v2562_v44 = vpop.eup %2561  ;;  %v3824_v0 = vmul.f32 %v2560_v58, %v3716_v49  ;;  %2575 = vpow2.f32 %v1290_v39  ;;  %v1292_v33 = vmul.f32 1.442695, %v1251_v12  ;;  %v1294_v3 = vmul.f32 1.442695, %v1252_v11 }
 0x349   :  { %1625 = vperm.xlu0 %2471, %v3796_v30   ;;  %v2564_v28 = vpop.eup %2563  ;;  %v3831_v9 = vmul.f32 %v2562_v44, %v3768_v56  ;;  %2577 = vpow2.f32 %v1324_v47  ;;  %v1270_v62 = vsub.f32 %v3622_v25, %v3746_v18  ;;  %v1296_v50 = vmul.f32 1.442695, %v1253_v41 }
 0x34a   :  { %1577 = vperm.xlu1 %2472, %v3801_v51   ;;  %v3836_v45 = vmul.f32 %v2564_v28, %v3743_v15  ;;  %2579 = vpow2.f32 %v1292_v33  ;;  %v1453_v42 = vpop.permute.xlu0 %1452  ;;  %v1271_v25 = vsub.f32 %v3653_v4, %v3746_v18  ;;  %v1272_v4 = vsub.f32 %v3681_v2, %v3746_v18 }
 0x34b   :  { %2581 = vpow2.f32 %v1326_v16  ;;  %v1330_v58 = vmul.f32 1.442695, %v1270_v62  ;;  %v1273_v2 = vsub.f32 %v3700_v53, %v3746_v18 }
 0x34c   :  { %2583 = vpow2.f32 %v1294_v3  ;;  %v1332_v44 = vmul.f32 1.442695, %v1271_v25  ;;  %v1334_v11 = vmul.f32 1.442695, %v1272_v4 }
 0x34d   :  { %1628 = vperm.xlu0 %2471, %v3807_v31   ;;  %v2566_v49 = vpop.eup %2565  ;;  %2585 = vpow2.f32 %v1328_v32  ;;  %v1336_v16 = vmul.f32 1.442695, %v1273_v2 }
 0x34e   :  { %1580 = vperm.xlu1 %2472, %v3812_v55   ;;  %v2568_v40 = vpop.eup %2567  ;;  %v3843_v56 = vmul.f32 %v2566_v49, %v3779_v48  ;;  %2587 = vpow2.f32 %v1296_v50  ;;  %v1257_v49 = vsub.f32 %v3679_v29, %v3741_v23 }
 0x34f   :  { %v2570_v15 = vpop.eup %2569  ;;  %v3848_v57 = vmul.f32 %v2568_v40, %v3724_v38  ;;  %2589 = vpow2.f32 %v1330_v58 }
 0x350   :  { %v2572_v6 = vpop.eup %2571  ;;  %v3854_v48 = vmul.f32 %v2570_v15, %v1441_v54  ;;  %v1255_v54 = vsub.f32 %v3595_v14, %v3741_v23  ;;  %2591 = vpow2.f32 %v1298_v24  ;;  %v1304_v18 = vmul.f32 1.442695, %v1257_v49  ;;  %v1398_v15 = vpop.permute.xlu1 %1397 }
 0x351   :  { %1631 = vperm.xlu0 %2471, %v3819_v1   ;;  %v2574_v38 = vpop.eup %2573  ;;  %v3859_v63 = vmul.f32 %v2572_v6, %v3726_v7  ;;  %v1457_v7 = vpop.permute.xlu0 %1456  ;;  %2593 = vpow2.f32 %v1332_v44 }
 0x352   :  { %1583 = vperm.xlu1 %2472, %v3824_v0   ;;  %4370 = vst [vmem:[#allocation47_spill] sm:$0xff] %v3854_v48  ;;  %v2576_v35 = vpop.eup %2575  ;;  %v3867_v21 = vmul.f32 %v2574_v38, %v1445_v61  ;;  %v1300_v14 = vmul.f32 1.442695, %v1255_v54  ;;  %v1256_v61 = vsub.f32 %v3639_v13, %v3741_v23 }
 0x353   :  { %v2578_v26 = vpop.eup %2577  ;;  %v3870_v39 = vmul.f32 %v2576_v35, %v3728_v36 }
 0x354   :  { %4371 = vst [vmem:[#allocation48_spill] sm:$0xff] %v3867_v21  ;;  %v2580_v12 = vpop.eup %2579  ;;  %v3878_v28 = vmul.f32 %v2578_v26, %v1449_v37  ;;  %2595 = vpow2.f32 %v1300_v14  ;;  %v1302_v13 = vmul.f32 1.442695, %v1256_v61  ;;  %v1402_v50 = vpop.permute.xlu1 %1401 }
 0x355   :  { %1634 = vperm.xlu0 %2471, %v3831_v9   ;;  %v2582_v47 = vpop.eup %2581  ;;  %v3881_v36 = vmul.f32 %v2580_v12, %v3730_v19  ;;  %v1461_v33 = vpop.permute.xlu0 %1460  ;;  %2597 = vpow2.f32 %v1334_v11 }
 0x356   :  { %1586 = vperm.xlu1 %2472, %v3836_v45   ;;  %4372 = vst [vmem:[#allocation49_spill] sm:$0xff] %v3878_v28  ;;  %v2584_v5 = vpop.eup %2583  ;;  %v3889_v37 = vmul.f32 %v2582_v47, %v1453_v42  ;;  %2599 = vpow2.f32 %v1302_v13 }
 0x357   :  { %v2586_v19 = vpop.eup %2585  ;;  %v3892_v40 = vmul.f32 %v2584_v5, %v3732_v27  ;;  %2601 = vpow2.f32 %v1336_v16 }
 0x358   :  { %4373 = vst [vmem:[#allocation50_spill] sm:$0xff] %v3889_v37  ;;  %v2588_v59 = vpop.eup %2587  ;;  %v3896_v53 = vmul.f32 %v2586_v19, %v1457_v7  ;;  %2603 = vpow2.f32 %v1304_v18  ;;  %v1406_v26 = vpop.permute.xlu1 %1405 }
 0x359   :  { %1637 = vperm.xlu0 %2471, %v3843_v56   ;;  %v2590_v3 = vpop.eup %2589  ;;  %v1465_v41 = vpop.permute.xlu0 %1464  ;;  %v3899_v29 = vmul.f32 %v2588_v59, %v3734_v43 }
 0x35a   :  { %1589 = vperm.xlu1 %2472, %v3848_v57   ;;  %4374 = vst [vmem:[#allocation51_spill] sm:$0xff] %v3896_v53  ;;  %v2592_v23 = vpop.eup %2591  ;;  %v3903_v27 = vmul.f32 %v2590_v3, %v1461_v33 }
 0x35b   :  { %v2594_v6 = vpop.eup %2593  ;;  %v3906_v42 = vmul.f32 %v2592_v23, %v3736_v34 }
 0x35c   :  { %4375 = vst [vmem:[#allocation52_spill] sm:$0xff] %v3903_v27  ;;  %v3910_v43 = vmul.f32 %v2594_v6, %v1465_v41 }
 0x35d   :  { %1640 = vperm.xlu0 %2471, %v3854_v48   ;;  %v1469_v62 = vpop.permute.xlu0 %1468 }
 0x35e   :  { %1592 = vperm.xlu1 %2472, %v3859_v63   ;;  %v2596_v32 = vpop.eup %2595  ;;  %4376 = vst [vmem:[#allocation53_spill] sm:$0xff] %v3910_v43 }
 0x35f   :  { %v2598_v60 = vpop.eup %2597  ;;  %v3912_v38 = vmul.f32 %v2596_v32, %v1398_v15 }
 0x360   :  { %v2600_v35 = vpop.eup %2599  ;;  %v3916_v58 = vmul.f32 %v2598_v60, %v1469_v62 }
 0x361   :  { %1643 = vperm.xlu0 %2471, %v3867_v21   ;;  %v2602_v34 = vpop.eup %2601  ;;  %v3918_v25 = vmul.f32 %v2600_v35, %v1402_v50  ;;  %v1473_v54 = vpop.permute.xlu0 %1472  ;;  %v4381_v21 = vld [vmem:[#allocation32_spill] sm:$0xff] }
 0x362   :  { %1595 = vperm.xlu1 %2472, %v3870_v39   ;;  %4377 = vst [vmem:[#allocation54_spill] sm:$0xff] %v3916_v58  ;;  %v2604_v24 = vpop.eup %2603  ;;  %v3922_v7 = vmul.f32 %v2602_v34, %v1473_v54 }
 0x363   :  { %v3924_v12 = vmul.f32 %v2604_v24, %v1406_v26 }
 0x364   :  { %4378 = vst [vmem:[#allocation55_spill] sm:$0xff] %v3922_v7 }
 0x365   :  { %1646 = vperm.xlu0 %2471, %v3878_v28  }
 0x366   :  { %1598 = vperm.xlu1 %2472, %v3881_v36  }
 0x369   :  { %1649 = vperm.xlu0 %2471, %v3889_v37  }
 0x36a   :  { %1601 = vperm.xlu1 %2472, %v3892_v40  }
 0x36d   :  { %1652 = vperm.xlu0 %2471, %v3896_v53   ;;  %v4380_v53 = vld [vmem:[#allocation36_spill] sm:$0xff] }
 0x36e   :  { %1604 = vperm.xlu1 %2472, %v3899_v29  }
 0x371   :  { %1655 = vperm.xlu0 %2471, %v3903_v27  }
 0x372   :  { %1607 = vperm.xlu1 %2472, %v3906_v42  }
 0x375   :  { %1658 = vperm.xlu0 %2471, %v3910_v43  }
 0x376   :  { %1610 = vperm.xlu1 %2472, %v3912_v38  }
 0x379   :  { %1661 = vperm.xlu0 %2471, %v3916_v58   ;;  %v4379_v58 = vld [vmem:[#allocation33_spill] sm:$0xff] }
 0x37a   :  { %1613 = vperm.xlu1 %2472, %v3918_v25  }
 0x37d   :  { %1664 = vperm.xlu0 %2471, %v3922_v7  }
 0x37e   :  { %1616 = vperm.xlu1 %2472, %v3924_v12  }
 0x3c0   :  { %v1575_v44 = vpop.permute.xlu0 %1574 }
 0x3c1   :  { %v1572_v4 = vpop.permute.xlu1 %1571  ;;  %v1673_v24 = vrot.slane %v1575_v44, %v3551_v46 }
 0x3c2   :  { %v1669_v54 = vrot.slane %v1572_v4, %v3548_v20 }
 0x3c4   :  { %v1623_v14 = vpop.permute.xlu0 %1622  ;;  %v1674_v44 = vsel %vm1045_vm2, %v1673_v24, %v1669_v54  ;;  %v4384_v24 = vld [vmem:[#allocation39_spill] sm:$0xff] }
 0x3c5   :  { %v1620_v61 = vpop.permute.xlu1 %1619  ;;  %v1752_v35 = vrot.slane %v1623_v14, %v3551_v46 }
 0x3c6   :  { %v1748_v60 = vrot.slane %v1620_v61, %v3548_v20 }
 0x3c8   :  { %v1626_v47 = vpop.permute.xlu0 %1625  ;;  %v1753_v61 = vsel %vm1045_vm2, %v1752_v35, %v1748_v60  ;;  %v4383_v60 = vld [vmem:[#allocation38_spill] sm:$0xff] }
 0x3c9   :  { %v1578_v5 = vpop.permute.xlu1 %1577  ;;  %v1757_v26 = vrot.slane %v1626_v47, %v3554_v22 }
 0x3ca   :  { %v1678_v7 = vrot.slane %v1578_v5, %v3554_v22  ;;  %v4382_v22 = vld [vmem:[#allocation37_spill] sm:$0xff] }
 0x3cb   :  { %v1758_v47 = vsel %vm1052_vm3, %v1757_v26, %v1753_v61 }
 0x3cc   :  { %v1629_v33 = vpop.permute.xlu0 %1628 }
 0x3cd   :  { %v1581_v11 = vpop.permute.xlu1 %1580  ;;  %v1762_v43 = vrot.slane %v1629_v33, %v4379_v58 }
 0x3ce   :  { %v1683_v27 = vrot.slane %v1581_v11, %v4379_v58  ;;  %v1679_v11 = vsel %vm1052_vm3, %v1678_v7, %v1674_v44 }
 0x3d0   :  { %v1632_v2 = vpop.permute.xlu0 %1631 }
 0x3d1   :  { %v1584_v13 = vpop.permute.xlu1 %1583  ;;  %v1767_v37 = vrot.slane %v1632_v2, %v4380_v53  ;;  %v1763_v2 = vsel %vm1059_vm4, %v1762_v43, %v1758_v47  ;;  %v4385_v43 = vld [vmem:[#allocation40_spill] sm:$0xff]  ;;  %v4386_v47 = vld [vmem:[#allocation41_spill] sm:$0xff] }
 0x3d2   :  { %v1688_v14 = vrot.slane %v1584_v13, %v4380_v53  ;;  %v1684_v13 = vsel %vm1059_vm4, %v1683_v27, %v1679_v11 }
 0x3d4   :  { %v1635_v49 = vpop.permute.xlu0 %1634 }
 0x3d5   :  { %v1587_v19 = vpop.permute.xlu1 %1586  ;;  %v1772_v48 = vrot.slane %v1635_v49, %v4381_v21  ;;  %v1768_v49 = vsel %vm1066_vm5, %v1767_v37, %v1763_v2 }
 0x3d6   :  { %v1693_v5 = vrot.slane %v1587_v19, %v4381_v21  ;;  %v1689_v19 = vsel %vm1066_vm5, %v1688_v14, %v1684_v13  ;;  %v4388_v13 = vld [vmem:[#allocation43_spill] sm:$0xff] }
 0x3d8   :  { %v1638_v59 = vpop.permute.xlu0 %1637 }
 0x3d9   :  { %v1590_v16 = vpop.permute.xlu1 %1589  ;;  %v1777_v33 = vrot.slane %v1638_v59, %v4382_v22  ;;  %v1773_v59 = vsel %vm1073_vm6, %v1772_v48, %v1768_v49  ;;  %v4387_v48 = vld [vmem:[#allocation42_spill] sm:$0xff] }
 0x3da   :  { %v1698_v58 = vrot.slane %v1590_v16, %v4382_v22 }
 0x3db   :  { %v1778_v27 = vsel %vm1080_vm7, %v1777_v33, %v1773_v59  ;;  %v4390_v59 = vld [vmem:[#allocation45_spill] sm:$0xff] }
 0x3dc   :  { %v1641_v18 = vpop.permute.xlu0 %1640 }
 0x3dd   :  { %v1593_v3 = vpop.permute.xlu1 %1592  ;;  %v1782_v35 = vrot.slane %v1641_v18, %v4383_v60  ;;  %v1694_v18 = vsel %vm1073_vm6, %v1693_v5, %v1689_v19 }
 0x3de   :  { %v1703_v54 = vrot.slane %v1593_v3, %v4383_v60 }
 0x3df   :  { %v1783_v11 = vsel %vm4339_vm8, %v1782_v35, %v1778_v27  ;;  %v4389_v35 = vld [vmem:[#allocation44_spill] sm:$0xff] }
 0x3e0   :  { %v1644_v41 = vpop.permute.xlu0 %1643 }
 0x3e1   :  { %v1596_v23 = vpop.permute.xlu1 %1595  ;;  %v1787_v26 = vrot.slane %v1644_v41, %v4384_v24  ;;  %v1699_v41 = vsel %vm1080_vm7, %v1698_v58, %v1694_v18 }
 0x3e2   :  { %v1708_v7 = vrot.slane %v1596_v23, %v4384_v24  ;;  %v1704_v23 = vsel %vm4339_vm8, %v1703_v54, %v1699_v41  ;;  %vm4391_vm8 = vcmask 786112   ;;  %v4393_v41 = vld [vmem:[#allocation46_spill] sm:$0xff] }
 0x3e4   :  { %v1647_v15 = vpop.permute.xlu0 %1646 }
 0x3e5   :  { %v1599_v6 = vpop.permute.xlu1 %1598  ;;  %v1792_v44 = vrot.slane %v1647_v15, %v4385_v43  ;;  %v1788_v15 = vsel %vm4340_vm9, %v1787_v26, %v1783_v11 }
 0x3e6   :  { %v1713_v37 = vrot.slane %v1599_v6, %v4385_v43  ;;  %v1709_v6 = vsel %vm4340_vm9, %v1708_v7, %v1704_v23  ;;  %vm4392_vm9 = vmmov %vm4391_vm8 }
 0x3e8   :  { %v1650_v32 = vpop.permute.xlu0 %1649 }
 0x3e9   :  { %v1602_v62 = vpop.permute.xlu1 %1601  ;;  %v1797_v3 = vrot.slane %v1650_v32, %v4386_v47  ;;  %v1793_v32 = vsel %vm1101_vm10, %v1792_v44, %v1788_v15 }
 0x3ea   :  { %v1718_v14 = vrot.slane %v1602_v62, %v4386_v47 }
 0x3eb   :  { %v1798_v54 = vsel %vm1108_vm11, %v1797_v3, %v1793_v32  ;;  %v4394_v32 = vld [vmem:[#allocation34_spill] sm:$0xff] }
 0x3ec   :  { %v1653_v50 = vpop.permute.xlu0 %1652 }
 0x3ed   :  { %v1605_v34 = vpop.permute.xlu1 %1604  ;;  %v1802_v2 = vrot.slane %v1653_v50, %v4387_v48  ;;  %v1714_v50 = vsel %vm1101_vm10, %v1713_v37, %v1709_v6 }
 0x3ee   :  { %v1723_v5 = vrot.slane %v1605_v34, %v4387_v48 }
 0x3ef   :  { %v1803_v18 = vsel %vm4391_vm8, %v1802_v2, %v1798_v54  ;;  %vm4405_vm8 = vcmask 261120  }
 0x3f0   :  { %v1656_v28 = vpop.permute.xlu0 %1655 }
 0x3f1   :  { %v1608_v4 = vpop.permute.xlu1 %1607  ;;  %v1807_v33 = vrot.slane %v1656_v28, %v4388_v13  ;;  %v1719_v28 = vsel %vm1108_vm11, %v1718_v14, %v1714_v50 }
 0x3f2   :  { %v1728_v58 = vrot.slane %v1608_v4, %v4388_v13  ;;  %v1724_v44 = vsel %vm4392_vm9, %v1723_v5, %v1719_v28  ;;  %vm4406_vm9 = vmmov %vm4405_vm8 }
 0x3f3   :  { %v1808_v4 = vsel %vm1122_vm13, %v1807_v33, %v1803_v18 }
 0x3f4   :  { %v1659_v61 = vpop.permute.xlu0 %1658  ;;  %v1729_v27 = vsel %vm1122_vm13, %v1728_v58, %v1724_v44 }
 0x3f5   :  { %v1611_v16 = vpop.permute.xlu1 %1610  ;;  %v1812_v19 = vrot.slane %v1659_v61, %v4389_v35 }
 0x3f6   :  { %v1733_v26 = vrot.slane %v1611_v16, %v4389_v35 }
 0x3f7   :  { %v1813_v37 = vsel %vm1129_vm14, %v1812_v19, %v1808_v4  ;;  %v4395_v19 = vld [vmem:[#allocation31_spill] sm:$0xff] }
 0x3f8   :  { %v1662_v49 = vpop.permute.xlu0 %1661  ;;  %v1734_v11 = vsel %vm1129_vm14, %v1733_v26, %v1729_v27 }
 0x3f9   :  { %v1614_v62 = vpop.permute.xlu1 %1613  ;;  %v1817_v34 = vrot.slane %v1662_v49, %v4390_v59 }
 0x3fa   :  { %v1738_v7 = vrot.slane %v1614_v62, %v4390_v59 }
 0x3fb   :  { %v1818_v14 = vsel %vm1136_vm15, %v1817_v34, %v1813_v37  ;;  %v4400_v37 = vld [vmem:[#allocation51_spill] sm:$0xff] }
 0x3fc   :  { %v1665_v61 = vpop.permute.xlu0 %1664  ;;  %v1739_v23 = vsel %vm1136_vm15, %v1738_v7, %v1734_v11  ;;  %v4402_v11 = vld [vmem:[#allocation53_spill] sm:$0xff] }
 0x3fd   :  { %v1617_v3 = vpop.permute.xlu1 %1616  ;;  %v1822_v16 = vrot.slane %v1665_v61, %v4393_v41  ;;  %v4398_v61 = vld [vmem:[#allocation49_spill] sm:$0xff] }
 0x3fe   :  { %v1743_v2 = vrot.slane %v1617_v3, %v4393_v41  ;;  %v4401_v3 = vld [vmem:[#allocation52_spill] sm:$0xff] }
 0x3ff   :  { %v1823_v15 = vsel %vm1143_vm1, %v1822_v16, %v1818_v14 }
 0x400   :  { %v1744_v5 = vsel %vm1143_vm1, %v1743_v2, %v1739_v23  ;;  %v4403_v2 = vld [vmem:[#allocation54_spill] sm:$0xff] }
 0x401   :  { %v1824_v33 = vsel %vm4341_vm0, %v1823_v15, %v1744_v5  ;;  %v4404_v15 = vld [vmem:[#allocation55_spill] sm:$0xff]  ;;  %vm4408_vm0 = vmmov %vm4405_vm8 }
 0x402   :  { %v1826_v49 = vsel %vm1227_vm12, %v1824_v33, 0.0  ;;  %vm4407_vm12 = vmmov %vm4405_vm8 }
 0x403   :  { %1827 = vadd.xlane.f32.xlu1 %v1826_v49 }
 0x490   :  { %v1828_v6 = vpop.xlane.xlu1 %1827 }
 0x491   :  { %v1833_v58 = vrot.slane %v1828_v6, %v4394_v32  ;;  %v1837_v62 = vrot.slane %v1828_v6, %v4395_v19 }
 0x493   :  { %2605 = vrcp.f32 %v1833_v58 }
 0x494   :  { %2607 = vrcp.f32 %v1837_v62 }
 0x49d   :  { %v2606_v50 = vpop.eup %2605 }
 0x49e   :  { %v3994_v54 = vpop.eup %2607  ;;  %v1841_v26 = vmul.f32 %v2606_v50, %v3776_v17  ;;  %v1842_v28 = vmul.f32 %v2606_v50, %v3772_v10  ;;  %v1848_v18 = vmul.f32 %v2606_v50, %v3859_v63  ;;  %v1843_v7 = vmul.f32 %v2606_v50, %v3801_v51 }
 0x49f   :  { %v1862_v34 = vmul.f32 %v3994_v54, %v3819_v1  ;;  %v1849_v44 = vmul.f32 %v2606_v50, %v3870_v39  ;;  %v1844_v4 = vmul.f32 %v2606_v50, %v3812_v55  ;;  %v1850_v17 = vmul.f32 %v2606_v50, %v3881_v36 }
 0x4a0   :  { %1876 = vperm.xlu0 %2471, %v1841_v26   ;;  %v1858_v1 = vmul.f32 %v3994_v54, %v3789_v8  ;;  %v1851_v10 = vmul.f32 %v2606_v50, %v3892_v40  ;;  %v1859_v51 = vmul.f32 %v3994_v54, %v3784_v52  ;;  %v1852_v63 = vmul.f32 %v2606_v50, %v3899_v29 }
 0x4a1   :  { %1976 = vperm.xlu1 %2472, %v1862_v34   ;;  %v1860_v55 = vmul.f32 %v3994_v54, %v3796_v30  ;;  %v1853_v39 = vmul.f32 %v2606_v50, %v3906_v42  ;;  %v1861_v8 = vmul.f32 %v3994_v54, %v3807_v31  ;;  %v1854_v36 = vmul.f32 %v2606_v50, %v3912_v38  ;;  %v4396_v38 = vld [vmem:[#allocation47_spill] sm:$0xff] }
 0x4a2   :  { %v1845_v52 = vmul.f32 %v2606_v50, %v3824_v0  ;;  %v1855_v40 = vmul.f32 %v2606_v50, %v3918_v25  ;;  %v1846_v29 = vmul.f32 %v2606_v50, %v3836_v45  ;;  %v1856_v30 = vmul.f32 %v2606_v50, %v3924_v12  ;;  %v4397_v45 = vld [vmem:[#allocation48_spill] sm:$0xff] }
 0x4a3   :  { %v1863_v42 = vmul.f32 %v3994_v54, %v3831_v9  ;;  %v1847_v31 = vmul.f32 %v2606_v50, %v3848_v57  ;;  %v1864_v0 = vmul.f32 %v3994_v54, %v3843_v56  ;;  %v1865_v25 = vmul.f32 %v3994_v54, %v4396_v38  ;;  %v4399_v9 = vld [vmem:[#allocation50_spill] sm:$0xff] }
 0x4a4   :  { %1881 = vperm.xlu0 %2471, %v1842_v28   ;;  %v1866_v12 = vmul.f32 %v3994_v54, %v4397_v45  ;;  %v1867_v27 = vmul.f32 %v3994_v54, %v4398_v61  ;;  %v1868_v57 = vmul.f32 %v3994_v54, %v4399_v9  ;;  %v1869_v56 = vmul.f32 %v3994_v54, %v4400_v37 }
 0x4a5   :  { %1911 = vperm.xlu1 %2472, %v1848_v18   ;;  %v1870_v16 = vmul.f32 %v3994_v54, %v4401_v3  ;;  %v1871_v14 = vmul.f32 %v3994_v54, %v4402_v11  ;;  %v1872_v23 = vmul.f32 %v3994_v54, %v4403_v2  ;;  %v1873_v5 = vmul.f32 %v3994_v54, %v4404_v15  ;;  %v2617_v15 = vld [vmem:[#allocation2 + $0x40] sm:$0xff] }
 0x4a8   :  { %1886 = vperm.xlu0 %2471, %v1843_v7  }
 0x4a9   :  { %1916 = vperm.xlu1 %2472, %v1849_v44   ;;  %v2609_v44 = vld [vmem:[#allocation2 + $0x8] sm:$0xff] }
 0x4ac   :  { %1891 = vperm.xlu0 %2471, %v1844_v4  }
 0x4ad   :  { %1921 = vperm.xlu1 %2472, %v1850_v17  }
 0x4b0   :  { %1956 = vperm.xlu0 %2471, %v1858_v1  }
 0x4b1   :  { %1926 = vperm.xlu1 %2472, %v1851_v10   ;;  %v2610_v10 = vld [vmem:[#allocation2] sm:$0xff] }
 0x4b4   :  { %1961 = vperm.xlu0 %2471, %v1859_v51  }
 0x4b5   :  { %1931 = vperm.xlu1 %2472, %v1852_v63   ;;  %v2611_v63 = vld [vmem:[#allocation2 + $0x10] sm:$0xff] }
 0x4b8   :  { %1966 = vperm.xlu0 %2471, %v1860_v55  }
 0x4b9   :  { %1936 = vperm.xlu1 %2472, %v1853_v39  }
 0x4bc   :  { %1971 = vperm.xlu0 %2471, %v1861_v8   ;;  %v2612_v8 = vld [vmem:[#allocation2 + $0x18] sm:$0xff] }
 0x4bd   :  { %1941 = vperm.xlu1 %2472, %v1854_v36  }
 0x4c0   :  { %1896 = vperm.xlu0 %2471, %v1845_v52  }
 0x4c1   :  { %1946 = vperm.xlu1 %2472, %v1855_v40  }
 0x4c4   :  { %1901 = vperm.xlu0 %2471, %v1846_v29  }
 0x4c5   :  { %1951 = vperm.xlu1 %2472, %v1856_v30   ;;  %v2613_v30 = vld [vmem:[#allocation2 + $0x20] sm:$0xff] }
 0x4c8   :  { %1981 = vperm.xlu0 %2471, %v1863_v42  }
 0x4cc   :  { %1906 = vperm.xlu0 %2471, %v1847_v31  }
 0x4d0   :  { %1986 = vperm.xlu0 %2471, %v1864_v0  }
 0x4d4   :  { %1991 = vperm.xlu0 %2471, %v1865_v25   ;;  %v2614_v25 = vld [vmem:[#allocation2 + $0x28] sm:$0xff] }
 0x4d8   :  { %1996 = vperm.xlu0 %2471, %v1866_v12  }
 0x4dc   :  { %2001 = vperm.xlu0 %2471, %v1867_v27  }
 0x4e0   :  { %2006 = vperm.xlu0 %2471, %v1868_v57  }
 0x4e4   :  { %2011 = vperm.xlu0 %2471, %v1869_v56  }
 0x4e8   :  { %2016 = vperm.xlu0 %2471, %v1870_v16   ;;  %v2615_v16 = vld [vmem:[#allocation2 + $0x38] sm:$0xff] }
 0x4ec   :  { %2021 = vperm.xlu0 %2471, %v1871_v14   ;;  %v2616_v14 = vld [vmem:[#allocation2 + $0x30] sm:$0xff] }
 0x4f0   :  { %2026 = vperm.xlu0 %2471, %v1872_v23  }
 0x4f4   :  { %2031 = vperm.xlu0 %2471, %v1873_v5  }
 0x51f   :  { %v1877_v33 = vpop.permute.xlu0 %1876 }
 0x520   :  { %v2149_v6 = vrot.slane %v1877_v33, %v3548_v20  ;;  %v4049_v50 = vpop.permute.xlu1 %1976  ;;  %v2034_v51 = vmul.f32 %v2610_v10, %v1877_v33  ;;  %v2618_v10 = vld [vmem:[#allocation2 + $0x48] sm:$0xff] }
 0x522   :  { %v2066_v40 = vsel %vm4406_vm9, %v2034_v51, 0.0  ;;  %vm4410_vm9 = vmmov %vm4408_vm0 }
 0x523   :  { %v1882_v49 = vpop.permute.xlu0 %1881 }
 0x524   :  { %v2153_v32 = vrot.slane %v1882_v49, %v3551_v46  ;;  %v4053_v34 = vpop.permute.xlu1 %1911  ;;  %v2035_v4 = vmul.f32 %v2609_v44, %v1882_v49  ;;  %v4411_v49 = vld [vmem:[#allocation35_spill] sm:$0xff] }
 0x525   :  { %v2041_v11 = vmul.f32 %v2615_v16, %v4053_v34 }
 0x526   :  { %v2154_v58 = vsel %vm1045_vm2, %v2153_v32, %v2149_v6  ;;  %v2067_v39 = vsel %vm4405_vm8, %v2035_v4, 0.0  ;;  %vm4409_vm8 = vmmov %vm4408_vm0 }
 0x527   :  { %v1887_v19 = vpop.permute.xlu0 %1886  ;;  %v2068_v31 = vadd.f32 %v2067_v39, %v2066_v40  ;;  %v2619_v40 = vld [vmem:[#allocation2 + $0x50] sm:$0xff] }
 0x528   :  { %v4059_v18 = vpop.permute.xlu1 %1916  ;;  %v2036_v55 = vmul.f32 %v2611_v63, %v1887_v19  ;;  %v2158_v6 = vrot.slane %v1887_v19, %v4411_v49  ;;  %v4413_v63 = vld [vmem:[#allocation33_spill] sm:$0xff] }
 0x529   :  { %v2042_v5 = vmul.f32 %v2617_v15, %v4059_v18  ;;  %v2620_v19 = vld [vmem:[#allocation2 + $0x88] sm:$0xff] }
 0x52a   :  { %v2069_v29 = vsel %vm4407_vm12, %v2036_v55, 0.0  ;;  %vm4412_vm12 = vmmov %vm4408_vm0 }
 0x52b   :  { %v4047_v62 = vpop.permute.xlu0 %1891  ;;  %v2070_v12 = vadd.f32 %v2069_v29, %v2068_v31  ;;  %v2079_v4 = vsel %vm4412_vm12, %v2041_v11, 0.0  ;;  %v2623_v11 = vld [vmem:[#allocation2 + $0x58] sm:$0xff]  ;;  %vm4416_vm12 = vmmov %vm4408_vm0 }
 0x52c   :  { %v4063_v17 = vpop.permute.xlu1 %1921  ;;  %v2037_v36 = vmul.f32 %v2612_v8, %v4047_v62  ;;  %v2163_v55 = vrot.slane %v4047_v62, %v4413_v63 }
 0x52d   :  { %v2043_v51 = vmul.f32 %v2618_v10, %v4063_v17 }
 0x52e   :  { %v2071_v38 = vsel %vm4408_vm0, %v2037_v36, 0.0 }
 0x52f   :  { %v4051_v26 = vpop.permute.xlu0 %1956  ;;  %v2072_v9 = vadd.f32 %v2071_v38, %v2070_v12 }
 0x530   :  { %v4074_v0 = vpop.permute.xlu1 %1926 }
 0x531   :  { %v2044_v29 = vmul.f32 %v2619_v40, %v4074_v0 }
 0x533   :  { %v4055_v28 = vpop.permute.xlu0 %1961 }
 0x534   :  { %v4082_v37 = vpop.permute.xlu1 %1931 }
 0x537   :  { %v4057_v54 = vpop.permute.xlu0 %1966 }
 0x538   :  { %v4094_v39 = vpop.permute.xlu1 %1936 }
 0x53b   :  { %v4061_v7 = vpop.permute.xlu0 %1971 }
 0x53f   :  { %v4065_v1 = vpop.permute.xlu0 %1896 }
 0x540   :  { %v2038_v42 = vmul.f32 %v2613_v30, %v4065_v1  ;;  %v2051_v30 = vmul.f32 %v2620_v19, %v4055_v28  ;;  %v2168_v31 = vrot.slane %v4065_v1, %v4380_v53  ;;  %v2085_v1 = vsel %vm4408_vm0, %v2044_v29, 0.0  ;;  %v2626_v19 = vld [vmem:[#allocation2 + $0xa0] sm:$0xff] }
 0x542   :  { %v2073_v27 = vsel %vm4409_vm8, %v2038_v42, 0.0  ;;  %vm4414_vm8 = vmmov %vm4408_vm0  ;;  %v2159_v42 = vsel %vm1052_vm3, %v2158_v6, %v2154_v58 }
 0x543   :  { %v4069_v52 = vpop.permute.xlu0 %1901  ;;  %v2074_v56 = vadd.f32 %v2073_v27, %v2072_v9  ;;  %v2081_v36 = vsel %vm4414_vm8, %v2042_v5, 0.0  ;;  %v2622_v27 = vld [vmem:[#allocation2 + $0x90] sm:$0xff]  ;;  %v4115_v5 = vpop.permute.xlu1 %1941  ;;  %vm4417_vm8 = vmmov %vm4408_vm0 }
 0x544   :  { %v2039_v45 = vmul.f32 %v2614_v25, %v4069_v52  ;;  %v2052_v9 = vmul.f32 %v2622_v27, %v4057_v54  ;;  %v2628_v27 = vld [vmem:[#allocation2 + $0x68] sm:$0xff] }
 0x546   :  { %v2075_v57 = vsel %vm4410_vm9, %v2039_v45, 0.0  ;;  %vm4415_vm9 = vmmov %vm4408_vm0  ;;  %v2621_v45 = vld [vmem:[#allocation2 + $0x80] sm:$0xff] }
 0x547   :  { %v4078_v61 = vpop.permute.xlu0 %1981  ;;  %v2076_v23 = vadd.f32 %v2075_v57, %v2074_v56  ;;  %v2083_v62 = vsel %vm4415_vm9, %v2043_v51, 0.0  ;;  %v2050_v12 = vmul.f32 %v2621_v45, %v4051_v26  ;;  %v2173_v57 = vrot.slane %v4069_v52, %v4381_v21  ;;  %vm4418_vm9 = vmmov %vm4408_vm0 }
 0x548   :  { %v2164_v56 = vsel %vm1059_vm4, %v2163_v55, %v2159_v42  ;;  %v2183_v55 = vrot.slane %v4053_v34, %v4383_v60  ;;  %v2188_v34 = vrot.slane %v4059_v18, %v4384_v24 }
 0x54b   :  { %v1907_v3 = vpop.permute.xlu0 %1906 }
 0x54c   :  { %v2040_v2 = vmul.f32 %v2616_v14, %v1907_v3  ;;  %v2178_v16 = vrot.slane %v1907_v3, %v4382_v22  ;;  %v2045_v14 = vmul.f32 %v2623_v11, %v4082_v37  ;;  %v2106_v3 = vsel %vm4418_vm9, %v2052_v9, 0.0  ;;  %vm4421_vm9 = vmmov %vm4408_vm0 }
 0x54d   :  { %v2047_v9 = vmul.f32 %v2628_v27, %v4115_v5 }
 0x54e   :  { %v2077_v33 = vsel %vm4408_vm0, %v2040_v2, 0.0  ;;  %v2104_v2 = vsel %vm4416_vm12, %v2051_v30, 0.0  ;;  %vm4419_vm12 = vmmov %vm4408_vm0  ;;  %v2054_v30 = vmul.f32 %v2626_v19, %v4049_v50 }
 0x54f   :  { %v2078_v32 = vadd.f32 %v2077_v33, %v2076_v23  ;;  %v4088_v44 = vpop.permute.xlu0 %1986  ;;  %v2624_v23 = vld [vmem:[#allocation2 + $0x98] sm:$0xff]  ;;  %v2169_v33 = vsel %vm1066_vm5, %v2168_v31, %v2164_v56  ;;  %v4137_v56 = vpop.permute.xlu1 %1946 }
 0x550   :  { %v2053_v15 = vmul.f32 %v2624_v23, %v4061_v7  ;;  %v2110_v11 = vsel %vm4408_vm0, %v2054_v30, 0.0  ;;  %v2633_v30 = vld [vmem:[#allocation2 + $0xc8] sm:$0xff] }
 0x551   :  { %v2080_v8 = vadd.f32 %v2079_v4, %v2078_v32  ;;  %v2103_v32 = vsel %vm4417_vm8, %v2050_v12, 0.0  ;;  %v2174_v4 = vsel %vm1073_vm6, %v2173_v57, %v2169_v33  ;;  %vm4420_vm8 = vcmask 523712  }
 0x552   :  { %v2105_v10 = vadd.f32 %v2104_v2, %v2103_v32  ;;  %v2179_v51 = vsel %vm1080_vm7, %v2178_v16, %v2174_v4  ;;  %v2108_v29 = vsel %vm4419_vm12, %v2053_v15, 0.0  ;;  %v2629_v16 = vld [vmem:[#allocation2 + $0xb0] sm:$0xff]  ;;  %vm4422_vm12 = vcmask 589312   ;;  %v2630_v32 = vld [vmem:[#allocation2 + $0xb8] sm:$0xff] }
 0x553   :  { %v2082_v38 = vadd.f32 %v2081_v36, %v2080_v8  ;;  %v4102_v25 = vpop.permute.xlu0 %1991  ;;  %v2087_v8 = vsel %vm4408_vm0, %v2045_v14, 0.0  ;;  %v2625_v36 = vld [vmem:[#allocation2 + $0x60] sm:$0xff]  ;;  %v2184_v12 = vsel %vm4420_vm8, %v2183_v55, %v2179_v51  ;;  %v2232_v14 = vrot.slane %v4055_v28, %v3551_v46  ;;  %vm4423_vm8 = vmmov %vm4408_vm0  ;;  %v2631_v51 = vld [vmem:[#allocation2 + $0x70] sm:$0xff] }
 0x554   :  { %v2046_v40 = vmul.f32 %v2625_v36, %v4094_v39  ;;  %v2107_v42 = vadd.f32 %v2106_v3, %v2105_v10  ;;  %v2189_v23 = vsel %vm4422_vm12, %v2188_v34, %v2184_v12  ;;  %v2193_v15 = vrot.slane %v4063_v17, %v4385_v43  ;;  %vm4425_vm12 = vmmov %vm4408_vm0  ;;  %v2634_v34 = vld [vmem:[#allocation2 + $0x78] sm:$0xff] }
 0x555   :  { %v2084_v58 = vadd.f32 %v2083_v62, %v2082_v38  ;;  %v2627_v62 = vld [vmem:[#allocation2 + $0xa8] sm:$0xff]  ;;  %v2237_v33 = vrot.slane %v4057_v54, %v4411_v49  ;;  %v2057_v3 = vmul.f32 %v2630_v32, %v4102_v25  ;;  %v2228_v4 = vrot.slane %v4051_v26, %v3548_v20  ;;  %v2632_v49 = vld [vmem:[#allocation2 + $0xc0] sm:$0xff]  ;;  %v4165_v26 = vpop.permute.xlu1 %1951 }
 0x556   :  { %v2055_v45 = vmul.f32 %v2627_v62, %v4078_v61  ;;  %v2109_v57 = vadd.f32 %v2108_v29, %v2107_v42  ;;  %v2242_v28 = vrot.slane %v4061_v7, %v4413_v63  ;;  %v2048_v17 = vmul.f32 %v2631_v51, %v4137_v56 }
 0x557   :  { %v2086_v52 = vadd.f32 %v2085_v1, %v2084_v58  ;;  %v4118_v6 = vpop.permute.xlu0 %1996  ;;  %v2089_v58 = vsel %vm4421_vm9, %v2046_v40, 0.0  ;;  %v2056_v1 = vmul.f32 %v2629_v16, %v4088_v44  ;;  %vm4424_vm9 = vmmov %vm4408_vm0  ;;  %v2194_v55 = vsel %vm1101_vm10, %v2193_v15, %v2189_v23  ;;  %v2636_v15 = vld [vmem:[#allocation2 + $0xd8] sm:$0xff] }
 0x558   :  { %v2091_v46 = vsel %vm4424_vm9, %v2047_v9, 0.0  ;;  %v2111_v10 = vadd.f32 %v2110_v11, %v2109_v57  ;;  %v2198_v36 = vrot.slane %v4074_v0, %v4386_v47  ;;  %v2233_v20 = vsel %vm1045_vm2, %v2232_v14, %v2228_v4  ;;  %vm4426_vm2 = vmmov %vm4408_vm0  ;;  %v2635_v57 = vld [vmem:[#allocation2 + $0xd0] sm:$0xff]  ;;  %v2637_v4 = vld [vmem:[#allocation2 + $0xe0] sm:$0xff] }
 0x559   :  { %v2088_v31 = vadd.f32 %v2087_v8, %v2086_v52  ;;  %v2112_v52 = vsel %vm4423_vm8, %v2055_v45, 0.0  ;;  %v2114_v54 = vsel %vm4408_vm0, %v2056_v1, 0.0  ;;  %v2058_v8 = vmul.f32 %v2632_v49, %v4118_v6  ;;  %vm4427_vm8 = vmmov %vm4408_vm0 }
 0x55a   :  { %v2113_v40 = vadd.f32 %v2112_v52, %v2111_v10  ;;  %v2238_v29 = vsel %vm1052_vm3, %v2237_v33, %v2233_v20  ;;  %v2116_v19 = vsel %vm4425_vm12, %v2057_v3, 0.0  ;;  %v2199_v62 = vsel %vm1108_vm11, %v2198_v36, %v2194_v55  ;;  %vm4428_vm3 = vmmov %vm4408_vm0 }
 0x55b   :  { %v4130_v38 = vpop.permute.xlu0 %2001  ;;  %v2090_v2 = vadd.f32 %v2089_v58, %v2088_v31  ;;  %v2203_v31 = vrot.slane %v4082_v37, %v4387_v48  ;;  %v2243_v0 = vsel %vm1059_vm4, %v2242_v28, %v2238_v29  ;;  %v2093_v12 = vsel %vm4426_vm2, %v2048_v17, 0.0  ;;  %vm4430_vm9 = vmmov %vm4408_vm0 }
 0x55c   :  { %v2059_v42 = vmul.f32 %v2633_v30, %v4130_v38  ;;  %v2115_v45 = vadd.f32 %v2114_v54, %v2113_v40  ;;  %v2049_v27 = vmul.f32 %v2634_v34, %v4165_v26  ;;  %v2118_v9 = vsel %vm4427_vm8, %v2058_v8, 0.0  ;;  %vm4433_vm2 = vmmov %vm4408_vm0  ;;  %v2639_v30 = vld [vmem:[#allocation2 + $0xf0] sm:$0xff] }
 0x55d   :  { %v2092_v63 = vadd.f32 %v2091_v46, %v2090_v2  ;;  %v2247_v16 = vrot.slane %v4049_v50, %v4380_v53  ;;  %v2208_v37 = vrot.slane %v4094_v39, %v4388_v13  ;;  %v2252_v2 = vrot.slane %v4078_v61, %v4381_v21 }
 0x55e   :  { %v2117_v1 = vadd.f32 %v2116_v19, %v2115_v45  ;;  %v2120_v23 = vsel %vm4428_vm3, %v2059_v42, 0.0  ;;  %vm4429_vm4 = vcmask 786112   ;;  %v2213_v32 = vrot.slane %v4115_v5, %v4389_v35  ;;  %vm4437_vm3 = vmmov %vm4408_vm0 }
 0x55f   :  { %v4145_v18 = vpop.permute.xlu0 %2006  ;;  %v2094_v14 = vadd.f32 %v2093_v12, %v2092_v63  ;;  %v2204_v52 = vsel %vm4429_vm4, %v2203_v31, %v2199_v62  ;;  %v2248_v53 = vsel %vm1066_vm5, %v2247_v16, %v2243_v0  ;;  %v2257_v50 = vrot.slane %v4088_v44, %v4382_v22  ;;  %vm4431_vm5 = vmmov %vm4408_vm0 }
 0x560   :  { %v2060_v58 = vmul.f32 %v2635_v57, %v4145_v18  ;;  %v2119_v39 = vadd.f32 %v2118_v9, %v2117_v1  ;;  %v2095_v3 = vsel %vm4430_vm9, %v2049_v27, 0.0  ;;  %v2262_v21 = vrot.slane %v4102_v25, %v4383_v60  ;;  %v2638_v60 = vld [vmem:[#allocation2 + $0xe8] sm:$0xff]  ;;  %vm4436_vm8 = vmmov %vm4429_vm4  ;;  %v2640_v57 = vld [vmem:[#allocation2 + $0xf8] sm:$0xff] }
 0x561   :  { %v2267_v28 = vrot.slane %v4118_v6, %v4384_v24  ;;  %v2209_v51 = vsel %vm1122_vm13, %v2208_v37, %v2204_v52  ;;  %v2096_v17 = vadd.f32 %v2095_v3, %v2094_v14  ;;  %v2253_v22 = vsel %vm1073_vm6, %v2252_v2, %v2248_v53  ;;  %v2307_v1 = vld [vmem:[#allocation8] sm:$0x3] }
 0x562   :  { %v2122_v61 = vsel %vm4408_vm0, %v2060_v58, 0.0  ;;  %v2121_v10 = vadd.f32 %v2120_v23, %v2119_v39  ;;  %v2272_v44 = vrot.slane %v4130_v38, %v4385_v43  ;;  %v2258_v54 = vsel %vm1080_vm7, %v2257_v50, %v2253_v22  ;;  %vm4435_vm7 = vmmov %vm4408_vm0 }
 0x563   :  { %v4167_v7 = vpop.permute.xlu0 %2011  ;;  %v2277_v24 = vrot.slane %v4145_v18, %v4386_v47  ;;  %vm4432_vm12 = vcmask 523712   ;;  %v2214_v20 = vsel %vm1129_vm14, %v2213_v32, %v2209_v51  ;;  %vm4434_vm6 = vcmask 589312  }
 0x564   :  { %v2061_v33 = vmul.f32 %v2636_v15, %v4167_v7  ;;  %v2123_v49 = vadd.f32 %v2122_v61, %v2121_v10  ;;  %v2263_v6 = vsel %vm4432_vm12, %v2262_v21, %v2258_v54  ;;  %v2282_v8 = vrot.slane %v4167_v7, %v4387_v48 }
 0x565   :  { %v2268_v43 = vsel %vm4434_vm6, %v2267_v28, %v2263_v6  ;;  %v2097_v29 = vrot.slane %v2096_v17, 4  ;;  %v2218_v48 = vrot.slane %v4137_v56, %v4390_v59  ;;  %v2223_v56 = vrot.slane %v4165_v26, %v4393_v41 }
 0x566   :  { %v2124_v55 = vsel %vm4431_vm5, %v2061_v33, 0.0  ;;  %v2273_v19 = vsel %vm1101_vm10, %v2272_v44, %v2268_v43  ;;  %vm4438_vm10 = vmmov %vm4408_vm0 }
 0x567   :  { %v2017_v11 = vpop.permute.xlu0 %2016  ;;  %v2125_v38 = vadd.f32 %v2124_v55, %v2123_v49  ;;  %v2278_v7 = vsel %vm1108_vm11, %v2277_v24, %v2273_v19  ;;  %v2098_v27 = vadd.f32 %v2097_v29, %v2096_v17  ;;  %vm4439_vm11 = vcmask 1041409  }
 0x568   :  { %v2062_v46 = vmul.f32 %v2637_v4, %v2017_v11  ;;  %v2287_v40 = vrot.slane %v2017_v11, %v4388_v13  ;;  %v2283_v13 = vsel %vm4436_vm8, %v2282_v8, %v2278_v7 }
 0x569   :  { %v2099_v15 = vrot.slane %v2098_v27, 2 }
 0x56a   :  { %v2126_v36 = vsel %vm4433_vm2, %v2062_v46, 0.0  ;;  %v2288_v45 = vsel %vm1122_vm13, %v2287_v40, %v2283_v13 }
 0x56b   :  { %v2022_v5 = vpop.permute.xlu0 %2021  ;;  %v2127_v31 = vadd.f32 %v2126_v36, %v2125_v38 }
 0x56c   :  { %v2063_v25 = vmul.f32 %v2638_v60, %v2022_v5  ;;  %v2292_v18 = vrot.slane %v2022_v5, %v4389_v35  ;;  %v2219_v35 = vsel %vm1136_vm15, %v2218_v48, %v2214_v20 }
 0x56d   :  { %v2224_v14 = vsel %vm1143_vm1, %v2223_v56, %v2219_v35 }
 0x56e   :  { %v2128_v47 = vsel %vm4435_vm7, %v2063_v25, 0.0  ;;  %v2293_v9 = vsel %vm1129_vm14, %v2292_v18, %v2288_v45 }
 0x56f   :  { %v2027_v63 = vpop.permute.xlu0 %2026  ;;  %v2129_v12 = vadd.f32 %v2128_v47, %v2127_v31 }
 0x570   :  { %v2064_v42 = vmul.f32 %v2639_v30, %v2027_v63  ;;  %v2297_v0 = vrot.slane %v2027_v63, %v4390_v59 }
 0x572   :  { %v2130_v62 = vsel %vm4437_vm3, %v2064_v42, 0.0  ;;  %v2298_v37 = vsel %vm1136_vm15, %v2297_v0, %v2293_v9 }
 0x573   :  { %v2032_v34 = vpop.permute.xlu0 %2031  ;;  %v2131_v16 = vadd.f32 %v2130_v62, %v2129_v12 }
 0x574   :  { %v2065_v59 = vmul.f32 %v2640_v57, %v2032_v34  ;;  %v2302_v58 = vrot.slane %v2032_v34, %v4393_v41 }
 0x576   :  { %v2132_v11 = vsel %vm4438_vm10, %v2065_v59, 0.0  ;;  %v2303_v2 = vsel %vm1143_vm1, %v2302_v58, %v2298_v37 }
 0x577   :  { %v2133_v26 = vadd.f32 %v2132_v11, %v2131_v16  ;;  %v2304_v23 = vsel %vm4439_vm11, %v2303_v2, %v2224_v14 }
 0x578   :  { %2306 = vst [vmem:[#allocation20] sm:$0x3] %v2304_v23  ;;  %v2308_v33 = vadd.f32 %v2307_v1, %v2304_v23 }
 0x579   :  { %v2134_v41 = vrot.slane %v2133_v26, 4 }
 0x57a   :  { %2872 = shalt.err (!%p2869_p0)
}
 0x57b   :  { %s2873_s29 = scalar_lea.hbm %s4290_s11, 32 }
 0x57c   :  { %p2874_p1 = scmp.ne.s32.totalorder %s4290_s11, %s2873_s29  ;;  %p2877_p2 = scmp.lt.u32.totalorder %s2873_s29, %s4290_s11 }
 0x57e   :  { %p2879_p3 = pnand %p2877_p2, %p2874_p1 }
 0x580   :  { %2882 = shalt.err (!%p2879_p3)
}
 0x581   :  { %2329 = dma.vmem_to_hbm [thread:$0]  %s2327_s4, 32, %s4290_s11, [#allocation21]   ;;  %2309 = vst [vmem:[#allocation22] sm:$0x3] %v2308_v33  ;;  %v2135_v52 = vadd.f32 %v2134_v41, %v2133_v26  ;;  %v2100_v32 = vadd.f32 %v2099_v15, %v2098_v27 }
 0x582   :  { %s2883_s3 = scalar_lea.vmem %s4235_s23, 32  ;;  %p2888_p5 = scmp.lt.s32.totalorder %s4235_s23, %s4235_s23 }
 0x583   :  { %p2884_p4 = scmp.ne.s32.totalorder %s4235_s23, %s2883_s3  ;;  %p2889_p6 = scmp.lt.s32.totalorder %s2883_s3, %s2883_s3 }
 0x585   :  { %p2890_p7 = por %p2889_p6, %p2888_p5 }
 0x587   :  { %p2891_p8 = pnand %p2890_p7, %p2884_p4 }
 0x589   :  { %2894 = shalt.err (!%p2891_p8)
}
 0x58a   :  { %s2895_s16 = scalar_lea.hbm %s4291_s12, 32 }
 0x58b   :  { %p2896_p9 = scmp.ne.s32.totalorder %s4291_s12, %s2895_s16  ;;  %p2899_p10 = scmp.lt.u32.totalorder %s2895_s16, %s4291_s12 }
 0x58d   :  { %p2901_p11 = pnand %p2899_p10, %p2896_p9 }
 0x58f   :  { %2904 = shalt.err (!%p2901_p11)
}
 0x590   :  { %2339 = dma.vmem_to_hbm [thread:$0]  %s4235_s23, 32, %s4291_s12, [#allocation21]   ;;  %v2136_v53 = vrot.slane %v2135_v52, 2  ;;  %v2101_v39 = vrot.slane %v2100_v32, 1  ;;  %vm2144_vm13 = vcmask 254976   ;;  %vm4440_vm14 = vmmov %vm4439_vm11 }
 0x591   :  { %s2963_s21 = smov [#allocation19]  }
 0x592   :  { %v2137_v50 = vadd.f32 %v2136_v53, %v2135_v52  ;;  %s2316_s25 = sshll.u32 %s2963_s21, 4  ;;  %v2102_v21 = vadd.f32 %v2101_v39, %v2100_v32  ;;  %s2317_s25 = int_to_ptr.vmem [resolvable:$true] %s2316_s25 }
 0x593   :  { %s2905_s8 = scalar_lea.vmem %s2317_s25, 32  ;;  %p2910_p13 = scmp.lt.s32.totalorder %s2317_s25, %s2317_s25 }
 0x594   :  { %v2138_v3 = vrot.slane %v2137_v50, 1  ;;  %p2906_p12 = scmp.ne.s32.totalorder %s2317_s25, %s2905_s8  ;;  %p2911_p0 = scmp.lt.s32.totalorder %s2905_s8, %s2905_s8 }
 0x596   :  { %v2139_v61 = vadd.f32 %v2138_v3, %v2137_v50  ;;  %p2912_p1 = por %p2911_p0, %p2910_p13 }
 0x598   :  { %v2142_v4 = vsel %vm4440_vm14, %v2139_v61, %v2102_v21  ;;  %p2913_p2 = pnand %p2912_p1, %p2906_p12 }
 0x599   :  { %2145 = vst.msk [vmem:[#allocation19] sm:$0x3] %vm2144_vm13, %v2142_v4 }
 0x59a   :  { %2916 = shalt.err (!%p2913_p2)
}
 0x59b   :  { %s2917_s1 = scalar_lea.hbm %s4289_s10, 32 }
 0x59c   :  { %p2918_p3 = scmp.ne.s32.totalorder %s4289_s10, %s2917_s1  ;;  %p2921_p4 = scmp.lt.u32.totalorder %s2917_s1, %s4289_s10 }
 0x59e   :  { %p2923_p5 = pnand %p2921_p4, %p2918_p3 }
 0x5a0   :  { %2926 = shalt.err (!%p2923_p5)
}
 0x5a1   :  { %2319 = dma.vmem_to_hbm [thread:$0]  %s2317_s25, 32, %s4289_s10, [#allocation4]  }
 0x5a2   :  { %2939 = dma.done.wait [#allocation4], 32  }
 0x5a3   :  { %2940 = vsyncadd [#allocation4], 4294967264 }
 0x5a4   :  { %2941 = dma.done.wait [#allocation21], 64  }
 0x5a5   :  { %2942 = vsyncadd [#allocation21], 4294967232 }
 0x5a6   :  { %2349 = vsyncpa [#allocation3], 1 }
 0x5a7   :  { %2350 = vsyncpa [#allocation6], 1 }
 0x5a8   :  { %2351 = vsyncpa [#allocation9], 1 }
 0x5a9   :  { %2352 = vsyncpa [#allocation12], 1 }
 0x5aa   :  { %2353 = vsyncpa [#allocation15], 1 }
 0x5ab   :  { %2354 = vsyncpa [#allocation18], 1 }
 0x5ac   :  { %2355 = vsyncpa [#allocation4], 1 }
 0x5ad   :  { %2356 = vsyncpa [#allocation21], 1 }

</bundles_post_ra>
